<compile_context>
chip_gen: v7x
topology: tpu7x:2x2x1
jax: 0.10.0
libtpu: 0.0.40
codegen_flags: <defaults>
</compile_context>

<pallas_src>
import math

import jax
import jax.numpy as jnp
from jax.experimental import pallas as pl
from jax.experimental.pallas import tpu as pltpu

# ---------------- model config (scaled-down "bert-base") ----------------
VOCAB = 100
VOCAB_PAD = 128          # lane-dense padded vocab for the one-hot embedding matmul
HID = 32
NLAYERS = 2
NHEADS = 4
DHEAD = HID // NHEADS
INTER = 64
MAXPOS = 16
NUM_CLASSES = 5
CLS_PAD = 128            # lane-dense padded classifier width (sliced to 5 outside)
LN_EPS = 1e-12
ATT_SCALE = 1.0 / math.sqrt(DHEAD)

# ---------------- packed-slab geometry ----------------
W_ROWS = 64              # max(HID, INTER)
W_COLS = 256             # wqkv(96) | wo(32) | w1(64) | w2(32), lane-padded to 256
COL_QKV = 0
COL_WO = 3 * HID         # 96
COL_W1 = 128
COL_W2 = 192

VEC_ROWS = 24            # 20 rows used, padded to a multiple of 8
R_EMB_G, R_EMB_B = 0, 1
R_LAYER0 = 2             # per layer: bqkv, bo, ln1_g, ln1_b, b1, b2, ln2_g, ln2_b
R_POOL_B = R_LAYER0 + 8 * NLAYERS   # 18
R_CLS_B = R_POOL_B + 1              # 19

_VMEM = pl.BlockSpec(memory_space=pltpu.MemorySpace.VMEM)


# ------------------------- fused forward kernel -------------------------
def _make_forward_kernel(B, S):
    BS = B * S

    def kernel(ids_ref, mask_ref, emb_ref, wslab_ref, vec_ref, logits_ref):
        f32 = jnp.float32

        def vrow(r, w):                       # one packed bias/LN row -> (1, w)
            return vec_ref[r:r + 1, 0:w]

        def layernorm(x, g, b):
            mu = jnp.mean(x, axis=-1, keepdims=True)
            var = jnp.mean((x - mu) ** 2, axis=-1, keepdims=True)
            return (x - mu) * jax.lax.rsqrt(var + LN_EPS) * g + b

        # ---- embeddings: one-hot(ids) @ word_emb (MXU) + (pos + type0) ----
        ids = ids_ref[...]                                        # (BS, 1) int32
        iota = jax.lax.broadcasted_iota(jnp.int32, (BS, VOCAB_PAD), 1)
        onehot = jnp.where(iota == ids, 1.0, 0.0).astype(f32)     # (BS, 128)
        word = jnp.dot(onehot, emb_ref[0:VOCAB_PAD, :],
                       preferred_element_type=f32)                # (BS, HID)
        pos_type = emb_ref[VOCAB_PAD:VOCAB_PAD + S, :]            # (S, HID)
        x = word + jnp.concatenate([pos_type] * B, axis=0)        # (BS, HID)

        h = layernorm(x, vrow(R_EMB_G, HID), vrow(R_EMB_B, HID))

        # ---- additive attention mask, broadcast to every (batch, head) ----
        add_m = (1.0 - mask_ref[...].astype(f32)) * -10000.0      # (B, S)
        mask3 = jnp.stack(
            [jnp.broadcast_to(add_m[b:b + 1, :], (S, S))
             for b in range(B) for _ in range(NHEADS)], axis=0)   # (B*NH, S, S)

        for l in range(NLAYERS):                                  # unrolled
            base = R_LAYER0 + 8 * l
            wqkv = wslab_ref[l, 0:HID, COL_QKV:COL_QKV + 3 * HID]
            wo = wslab_ref[l, 0:HID, COL_WO:COL_WO + HID]
            w1 = wslab_ref[l, 0:HID, COL_W1:COL_W1 + INTER]
            w2 = wslab_ref[l, 0:INTER, COL_W2:COL_W2 + HID]

            # fused QKV projection (1/sqrt(DHEAD) already folded into Q columns)
            qkv = (jnp.dot(h, wqkv, preferred_element_type=f32)
                   + vrow(base + 0, 3 * HID))                     # (BS, 3*HID)

            # head-batched attention — values only, no VMEM scratch
            def heads(col0):                                      # (B*NH, S, DHEAD)
                return jnp.stack(
                    [qkv[b * S:(b + 1) * S,
                         col0 + hd * DHEAD:col0 + (hd + 1) * DHEAD]
                     for b in range(B) for hd in range(NHEADS)], axis=0)

            q3, k3, v3 = heads(0), heads(HID), heads(2 * HID)
            s = jnp.einsum('bqd,bkd->bqk', q3, k3,
                           preferred_element_type=f32) + mask3
            s = s - jnp.max(s, axis=-1, keepdims=True)
            p = jnp.exp(s)
            p = p * pl.reciprocal(jnp.sum(p, axis=-1, keepdims=True), approx=True)
            ctx3 = jnp.einsum('bqk,bkd->bqd', p, v3,
                              preferred_element_type=f32)         # (B*NH, S, DHEAD)
            ctx = jnp.concatenate(
                [jnp.concatenate([ctx3[b * NHEADS + hd] for hd in range(NHEADS)],
                                 axis=1)
                 for b in range(B)], axis=0)                      # (BS, HID)

            attn_out = (jnp.dot(ctx, wo, preferred_element_type=f32)
                        + vrow(base + 1, HID))
            h1 = layernorm(h + attn_out, vrow(base + 2, HID), vrow(base + 3, HID))

            ffn = (jnp.dot(h1, w1, preferred_element_type=f32)
                   + vrow(base + 4, INTER))
            # TODO(synk): HF 'gelu' is the exact erf GELU; tanh approximation used
            # here (guaranteed Mosaic lowering, tiny numerical drift).
            ffn = jax.nn.gelu(ffn, approximate=True)
            ffn = (jnp.dot(ffn, w2, preferred_element_type=f32)
                   + vrow(base + 5, HID))
            h = layernorm(h1 + ffn, vrow(base + 6, HID), vrow(base + 7, HID))

        # ---- pooler on CLS rows + classifier (Dropout(p=0.1) = identity) ----
        cls_rows = jnp.concatenate([h[b * S:b * S + 1, :] for b in range(B)],
                                   axis=0)                        # (B, HID)
        pool_w = wslab_ref[NLAYERS, 0:HID, 0:HID]
        cls_w = wslab_ref[NLAYERS, 0:HID, CLS_PAD:CLS_PAD + CLS_PAD]
        pooled = jnp.tanh(jnp.dot(cls_rows, pool_w, preferred_element_type=f32)
                          + vrow(R_POOL_B, HID))
        logits_ref[...] = (jnp.dot(pooled, cls_w, preferred_element_type=f32)
                           + vrow(R_CLS_B, CLS_PAD)).astype(logits_ref.dtype)

    return kernel


# ------------------------- parameter construction -------------------------
def init_params(key):
    keys = iter(jax.random.split(key, 64))

    def nrm(shape, scale=0.02):
        return (scale * jax.random.normal(next(keys), shape)).astype(jnp.float32)

    word_emb = nrm((VOCAB, HID))
    pos_emb = nrm((MAXPOS, HID))
    type_emb = nrm((2, HID))

    # embedding slab: lane-padded word-emb rows, then (pos + token-type-0) rows
    emb_slab = jnp.zeros((VOCAB_PAD + MAXPOS, HID), jnp.float32)
    emb_slab = emb_slab.at[:VOCAB, :].set(word_emb)
    emb_slab = emb_slab.at[VOCAB_PAD:, :].set(pos_emb + type_emb[0:1, :])

    # per-layer weight slab (+1 trailing slot for pooler / classifier weights)
    wslab = jnp.zeros((NLAYERS + 1, W_ROWS, W_COLS), jnp.float32)
    vec = jnp.zeros((VEC_ROWS, 128), jnp.float32)
    vec = vec.at[R_EMB_G, :HID].set(1.0)          # embedding LN gamma (beta = 0)
    for l in range(NLAYERS):
        wq = nrm((HID, HID)) * ATT_SCALE          # fold 1/sqrt(DHEAD) into Q
        wk = nrm((HID, HID))
        wv = nrm((HID, HID))
        wslab = wslab.at[l, :HID, COL_QKV:COL_QKV + HID].set(wq)
        wslab = wslab.at[l, :HID, COL_QKV + HID:COL_QKV + 2 * HID].set(wk)
        wslab = wslab.at[l, :HID, COL_QKV + 2 * HID:COL_QKV + 3 * HID].set(wv)
        wslab = wslab.at[l, :HID, COL_WO:COL_WO + HID].set(nrm((HID, HID)))
        wslab = wslab.at[l, :HID, COL_W1:COL_W1 + INTER].set(nrm((HID, INTER)))
        wslab = wslab.at[l, :INTER, COL_W2:COL_W2 + HID].set(nrm((INTER, HID)))
        base = R_LAYER0 + 8 * l
        vec = vec.at[base + 2, :HID].set(1.0)     # ln1 gamma
        vec = vec.at[base + 6, :HID].set(1.0)     # ln2 gamma
        # linear biases / LN betas stay zero (Q bias is zero, so no scale fold needed)
    wslab = wslab.at[NLAYERS, :HID, 0:HID].set(nrm((HID, HID)))              # pooler W
    wslab = wslab.at[NLAYERS, :HID, CLS_PAD:CLS_PAD + NUM_CLASSES].set(
        nrm((HID, NUM_CLASSES)))                                             # classifier W

    return {"emb_slab": emb_slab, "wslab": wslab, "vec_slab": vec}


# ------------------------------- forward ----------------------------------
def forward(params, input_ids, attention_mask):
    B, S = input_ids.shape
    BS = B * S

    # advisory cost hint (keeps XLA from mis-scheduling the custom call)
    flops = (2 * BS * VOCAB_PAD * HID
             + NLAYERS * (2 * BS * HID * (3 * HID + HID + 2 * INTER)
                          + 4 * B * NHEADS * S * S * DHEAD)
             + 2 * B * HID * HID + 2 * B * HID * CLS_PAD)
    transcendentals = NLAYERS * (B * NHEADS * S * S + BS * INTER) + B * HID
    bytes_accessed = 4 * (BS + B * S
                          + params["emb_slab"].size + params["wslab"].size
                          + params["vec_slab"].size + B * CLS_PAD)

    kernel = _make_forward_kernel(B, S)
    logits_padded = pl.pallas_call(
        kernel,
        out_shape=jax.ShapeDtypeStruct((B, CLS_PAD), jnp.float32),
        in_specs=[_VMEM] * 5,
        out_specs=_VMEM,
        cost_estimate=pl.CostEstimate(flops=flops,
                                      transcendentals=transcendentals,
                                      bytes_accessed=bytes_accessed),
    )(
        input_ids.reshape(BS, 1).astype(jnp.int32),   # token ids as a column
        attention_mask.astype(jnp.int32),             # raw 0/1 mask (additive in-kernel)
        params["emb_slab"], params["wslab"], params["vec_slab"],
    )
    return logits_padded[:, :NUM_CLASSES]


# --------------------------------- main ------------------------------------
if __name__ == "__main__":
    key = jax.random.PRNGKey(0)
    k_params, k_ids = jax.random.split(key)

    B, S = 2, 8
    input_ids = jax.random.randint(k_ids, (B, S), 0, VOCAB, dtype=jnp.int32)
    attention_mask = jnp.ones((B, S), dtype=jnp.int32)
    attention_mask = attention_mask.at[1, 6:].set(0)  # pad last 2 tokens of row 1

    params = init_params(k_params)

    logits = jax.jit(forward)(params, input_ids, attention_mask)
    logits = jax.block_until_ready(logits)

    assert logits.shape == (B, NUM_CLASSES)
    assert logits.dtype == jnp.float32
    assert bool(jnp.all(jnp.isfinite(logits)))
    print("KERNEL_OK")
</pallas_src>

<mosaic_0001>
module attributes {stable_mosaic.version = 11 : i64} {
  func.func @kernel(%arg0: memref<16x1xi32, #tpu.memory_space<vmem>>, %arg1: memref<2x8xi32, #tpu.memory_space<vmem>>, %arg2: memref<144x32xf32, #tpu.memory_space<vmem>>, %arg3: memref<3x64x256xf32, #tpu.memory_space<vmem>>, %arg4: memref<24x128xf32, #tpu.memory_space<vmem>>, %arg5: memref<2x128xf32, #tpu.memory_space<vmem>>) attributes {dimension_semantics = [], scalar_prefetch = 0 : i64, scratch_operands = 0 : i64, tpu.core_type = #tpu.core_type<tc>} {
    %c0 = arith.constant 0 : index
    %c0_0 = arith.constant 0 : index
    %0 = vector.load %arg0[%c0, %c0_0] : memref<16x1xi32, #tpu.memory_space<vmem>>, vector<16x1xi32>
    %1 = tpu.iota {dimensions = array<i32: 1>} : vector<16x128xi32>
    %2 = vector.broadcast %0 : vector<16x1xi32> to vector<16x128xi32>
    %3 = arith.cmpi eq, %1, %2 : vector<16x128xi32>
    %cst = arith.constant 1.000000e+00 : f32
    %cst_1 = arith.constant 0.000000e+00 : f32
    %4 = vector.broadcast %cst : f32 to vector<16x128xf32>
    %5 = vector.broadcast %cst_1 : f32 to vector<16x128xf32>
    %6 = arith.select %3, %4, %5 : vector<16x128xi1>, vector<16x128xf32>
    %c0_2 = arith.constant 0 : index
    %c0_3 = arith.constant 0 : index
    %7 = vector.load %arg2[%c0_2, %c0_3] : memref<144x32xf32, #tpu.memory_space<vmem>>, vector<128x32xf32>
    %cst_4 = arith.constant dense<0.000000e+00> : vector<16x32xf32>
    %8 = tpu.matmul %6, %7, %cst_4 {dimension_numbers = #tpu.dot_dimension_numbers<[1], [0], [0], [1], [0, 0, 1, 1], [], []>} : vector<16x128xf32>, vector<128x32xf32>, vector<16x32xf32> -> vector<16x32xf32>
    %c128 = arith.constant 128 : index
    %c0_5 = arith.constant 0 : index
    %9 = vector.load %arg2[%c128, %c0_5] : memref<144x32xf32, #tpu.memory_space<vmem>>, vector<8x32xf32>
    %10 = tpu.concatenate %9, %9 in 0 : vector<8x32xf32>, vector<8x32xf32> -> vector<16x32xf32>
    %11 = arith.addf %8, %10 : vector<16x32xf32>
    %c0_6 = arith.constant 0 : index
    %c0_7 = arith.constant 0 : index
    %12 = vector.load %arg4[%c0_6, %c0_7] : memref<24x128xf32, #tpu.memory_space<vmem>>, vector<1x32xf32>
    %c1 = arith.constant 1 : index
    %c0_8 = arith.constant 0 : index
    %13 = vector.load %arg4[%c1, %c0_8] : memref<24x128xf32, #tpu.memory_space<vmem>>, vector<1x32xf32>
    %cst_9 = arith.constant dense<0.000000e+00> : vector<16xf32>
    %14 = vector.multi_reduction <add>, %11, %cst_9 [1] : vector<16x32xf32> to vector<16xf32>
    %15 = vector.shape_cast %14 : vector<16xf32> to vector<16x1xf32>
    %cst_10 = arith.constant 3.200000e+01 : f32
    %16 = vector.broadcast %cst_10 : f32 to vector<16x1xf32>
    %17 = arith.divf %15, %16 : vector<16x1xf32>
    %18 = vector.broadcast %17 : vector<16x1xf32> to vector<16x32xf32>
    %19 = arith.subf %11, %18 : vector<16x32xf32>
    %20 = arith.mulf %19, %19 : vector<16x32xf32>
    %cst_11 = arith.constant dense<0.000000e+00> : vector<16xf32>
    %21 = vector.multi_reduction <add>, %20, %cst_11 [1] : vector<16x32xf32> to vector<16xf32>
    %22 = vector.shape_cast %21 : vector<16xf32> to vector<16x1xf32>
    %cst_12 = arith.constant 3.200000e+01 : f32
    %23 = vector.broadcast %cst_12 : f32 to vector<16x1xf32>
    %24 = arith.divf %22, %23 : vector<16x1xf32>
    %25 = vector.broadcast %17 : vector<16x1xf32> to vector<16x32xf32>
    %26 = arith.subf %11, %25 : vector<16x32xf32>
    %cst_13 = arith.constant 9.99999996E-13 : f32
    %27 = vector.broadcast %cst_13 : f32 to vector<16x1xf32>
    %28 = arith.addf %24, %27 : vector<16x1xf32>
    %29 = math.rsqrt %28 : vector<16x1xf32>
    %30 = vector.broadcast %29 : vector<16x1xf32> to vector<16x32xf32>
    %31 = arith.mulf %26, %30 : vector<16x32xf32>
    %32 = vector.broadcast %12 : vector<1x32xf32> to vector<16x32xf32>
    %33 = arith.mulf %31, %32 : vector<16x32xf32>
    %34 = vector.broadcast %13 : vector<1x32xf32> to vector<16x32xf32>
    %35 = arith.addf %33, %34 : vector<16x32xf32>
    %c0_14 = arith.constant 0 : index
    %c0_15 = arith.constant 0 : index
    %36 = vector.load %arg1[%c0_14, %c0_15] : memref<2x8xi32, #tpu.memory_space<vmem>>, vector<2x8xi32>
    %37 = arith.sitofp %36 : vector<2x8xi32> to vector<2x8xf32>
    %cst_16 = arith.constant 1.000000e+00 : f32
    %38 = vector.broadcast %cst_16 : f32 to vector<2x8xf32>
    %39 = arith.subf %38, %37 : vector<2x8xf32>
    %cst_17 = arith.constant -1.000000e+04 : f32
    %40 = vector.broadcast %cst_17 : f32 to vector<2x8xf32>
    %41 = arith.mulf %39, %40 : vector<2x8xf32>
    %42 = vector.extract_strided_slice %41 {offsets = [0, 0], sizes = [1, 8], strides = [1, 1]} : vector<2x8xf32> to vector<1x8xf32>
    %43 = vector.shape_cast %42 : vector<1x8xf32> to vector<1x8xf32>
    %44 = vector.broadcast %43 : vector<1x8xf32> to vector<8x8xf32>
    %45 = vector.extract_strided_slice %41 {offsets = [0, 0], sizes = [1, 8], strides = [1, 1]} : vector<2x8xf32> to vector<1x8xf32>
    %46 = vector.shape_cast %45 : vector<1x8xf32> to vector<1x8xf32>
    %47 = vector.broadcast %46 : vector<1x8xf32> to vector<8x8xf32>
    %48 = vector.extract_strided_slice %41 {offsets = [0, 0], sizes = [1, 8], strides = [1, 1]} : vector<2x8xf32> to vector<1x8xf32>
    %49 = vector.shape_cast %48 : vector<1x8xf32> to vector<1x8xf32>
    %50 = vector.broadcast %49 : vector<1x8xf32> to vector<8x8xf32>
    %51 = vector.extract_strided_slice %41 {offsets = [0, 0], sizes = [1, 8], strides = [1, 1]} : vector<2x8xf32> to vector<1x8xf32>
    %52 = vector.shape_cast %51 : vector<1x8xf32> to vector<1x8xf32>
    %53 = vector.broadcast %52 : vector<1x8xf32> to vector<8x8xf32>
    %54 = vector.extract_strided_slice %41 {offsets = [1, 0], sizes = [1, 8], strides = [1, 1]} : vector<2x8xf32> to vector<1x8xf32>
    %55 = vector.shape_cast %54 : vector<1x8xf32> to vector<1x8xf32>
    %56 = vector.broadcast %55 : vector<1x8xf32> to vector<8x8xf32>
    %57 = vector.extract_strided_slice %41 {offsets = [1, 0], sizes = [1, 8], strides = [1, 1]} : vector<2x8xf32> to vector<1x8xf32>
    %58 = vector.shape_cast %57 : vector<1x8xf32> to vector<1x8xf32>
    %59 = vector.broadcast %58 : vector<1x8xf32> to vector<8x8xf32>
    %60 = vector.extract_strided_slice %41 {offsets = [1, 0], sizes = [1, 8], strides = [1, 1]} : vector<2x8xf32> to vector<1x8xf32>
    %61 = vector.shape_cast %60 : vector<1x8xf32> to vector<1x8xf32>
    %62 = vector.broadcast %61 : vector<1x8xf32> to vector<8x8xf32>
    %63 = vector.extract_strided_slice %41 {offsets = [1, 0], sizes = [1, 8], strides = [1, 1]} : vector<2x8xf32> to vector<1x8xf32>
    %64 = vector.shape_cast %63 : vector<1x8xf32> to vector<1x8xf32>
    %65 = vector.broadcast %64 : vector<1x8xf32> to vector<8x8xf32>
    %66 = vector.shape_cast %44 : vector<8x8xf32> to vector<1x8x8xf32>
    %67 = vector.shape_cast %47 : vector<8x8xf32> to vector<1x8x8xf32>
    %68 = vector.shape_cast %50 : vector<8x8xf32> to vector<1x8x8xf32>
    %69 = vector.shape_cast %53 : vector<8x8xf32> to vector<1x8x8xf32>
    %70 = vector.shape_cast %56 : vector<8x8xf32> to vector<1x8x8xf32>
    %71 = vector.shape_cast %59 : vector<8x8xf32> to vector<1x8x8xf32>
    %72 = vector.shape_cast %62 : vector<8x8xf32> to vector<1x8x8xf32>
    %73 = vector.shape_cast %65 : vector<8x8xf32> to vector<1x8x8xf32>
    %74 = tpu.concatenate %66, %67, %68, %69, %70, %71, %72, %73 in 0 : vector<1x8x8xf32>, vector<1x8x8xf32>, vector<1x8x8xf32>, vector<1x8x8xf32>, vector<1x8x8xf32>, vector<1x8x8xf32>, vector<1x8x8xf32>, vector<1x8x8xf32> -> vector<8x8x8xf32>
    %c0_18 = arith.constant 0 : index
    %c0_19 = arith.constant 0 : index
    %c0_20 = arith.constant 0 : index
    %75 = vector.load %arg3[%c0_18, %c0_19, %c0_20] : memref<3x64x256xf32, #tpu.memory_space<vmem>>, vector<1x32x96xf32>
    %76 = vector.shape_cast %75 : vector<1x32x96xf32> to vector<32x96xf32>
    %c0_21 = arith.constant 0 : index
    %c0_22 = arith.constant 0 : index
    %c96 = arith.constant 96 : index
    %77 = vector.load %arg3[%c0_21, %c0_22, %c96] : memref<3x64x256xf32, #tpu.memory_space<vmem>>, vector<1x32x32xf32>
    %78 = vector.shape_cast %77 : vector<1x32x32xf32> to vector<32x32xf32>
    %c0_23 = arith.constant 0 : index
    %c0_24 = arith.constant 0 : index
    %c128_25 = arith.constant 128 : index
    %79 = vector.load %arg3[%c0_23, %c0_24, %c128_25] : memref<3x64x256xf32, #tpu.memory_space<vmem>>, vector<1x32x64xf32>
    %80 = vector.shape_cast %79 : vector<1x32x64xf32> to vector<32x64xf32>
    %c0_26 = arith.constant 0 : index
    %c0_27 = arith.constant 0 : index
    %c192 = arith.constant 192 : index
    %81 = vector.load %arg3[%c0_26, %c0_27, %c192] : memref<3x64x256xf32, #tpu.memory_space<vmem>>, vector<1x64x32xf32>
    %82 = vector.shape_cast %81 : vector<1x64x32xf32> to vector<64x32xf32>
    %cst_28 = arith.constant dense<0.000000e+00> : vector<16x96xf32>
    %83 = tpu.matmul %35, %76, %cst_28 {dimension_numbers = #tpu.dot_dimension_numbers<[1], [0], [0], [1], [0, 0, 1, 1], [], []>} : vector<16x32xf32>, vector<32x96xf32>, vector<16x96xf32> -> vector<16x96xf32>
    %c2 = arith.constant 2 : index
    %c0_29 = arith.constant 0 : index
    %84 = vector.load %arg4[%c2, %c0_29] : memref<24x128xf32, #tpu.memory_space<vmem>>, vector<1x96xf32>
    %85 = vector.broadcast %84 : vector<1x96xf32> to vector<16x96xf32>
    %86 = arith.addf %83, %85 : vector<16x96xf32>
    %87 = vector.extract_strided_slice %86 {offsets = [0, 0], sizes = [8, 8], strides = [1, 1]} : vector<16x96xf32> to vector<8x8xf32>
    %88 = vector.extract_strided_slice %86 {offsets = [0, 8], sizes = [8, 8], strides = [1, 1]} : vector<16x96xf32> to vector<8x8xf32>
    %89 = vector.extract_strided_slice %86 {offsets = [0, 16], sizes = [8, 8], strides = [1, 1]} : vector<16x96xf32> to vector<8x8xf32>
    %90 = vector.extract_strided_slice %86 {offsets = [0, 24], sizes = [8, 8], strides = [1, 1]} : vector<16x96xf32> to vector<8x8xf32>
    %91 = vector.extract_strided_slice %86 {offsets = [8, 0], sizes = [8, 8], strides = [1, 1]} : vector<16x96xf32> to vector<8x8xf32>
    %92 = vector.extract_strided_slice %86 {offsets = [8, 8], sizes = [8, 8], strides = [1, 1]} : vector<16x96xf32> to vector<8x8xf32>
    %93 = vector.extract_strided_slice %86 {offsets = [8, 16], sizes = [8, 8], strides = [1, 1]} : vector<16x96xf32> to vector<8x8xf32>
    %94 = vector.extract_strided_slice %86 {offsets = [8, 24], sizes = [8, 8], strides = [1, 1]} : vector<16x96xf32> to vector<8x8xf32>
    %95 = vector.shape_cast %87 : vector<8x8xf32> to vector<1x8x8xf32>
    %96 = vector.shape_cast %88 : vector<8x8xf32> to vector<1x8x8xf32>
    %97 = vector.shape_cast %89 : vector<8x8xf32> to vector<1x8x8xf32>
    %98 = vector.shape_cast %90 : vector<8x8xf32> to vector<1x8x8xf32>
    %99 = vector.shape_cast %91 : vector<8x8xf32> to vector<1x8x8xf32>
    %100 = vector.shape_cast %92 : vector<8x8xf32> to vector<1x8x8xf32>
    %101 = vector.shape_cast %93 : vector<8x8xf32> to vector<1x8x8xf32>
    %102 = vector.shape_cast %94 : vector<8x8xf32> to vector<1x8x8xf32>
    %103 = tpu.concatenate %95, %96, %97, %98, %99, %100, %101, %102 in 0 : vector<1x8x8xf32>, vector<1x8x8xf32>, vector<1x8x8xf32>, vector<1x8x8xf32>, vector<1x8x8xf32>, vector<1x8x8xf32>, vector<1x8x8xf32>, vector<1x8x8xf32> -> vector<8x8x8xf32>
    %104 = vector.extract_strided_slice %86 {offsets = [0, 32], sizes = [8, 8], strides = [1, 1]} : vector<16x96xf32> to vector<8x8xf32>
    %105 = vector.extract_strided_slice %86 {offsets = [0, 40], sizes = [8, 8], strides = [1, 1]} : vector<16x96xf32> to vector<8x8xf32>
    %106 = vector.extract_strided_slice %86 {offsets = [0, 48], sizes = [8, 8], strides = [1, 1]} : vector<16x96xf32> to vector<8x8xf32>
    %107 = vector.extract_strided_slice %86 {offsets = [0, 56], sizes = [8, 8], strides = [1, 1]} : vector<16x96xf32> to vector<8x8xf32>
    %108 = vector.extract_strided_slice %86 {offsets = [8, 32], sizes = [8, 8], strides = [1, 1]} : vector<16x96xf32> to vector<8x8xf32>
    %109 = vector.extract_strided_slice %86 {offsets = [8, 40], sizes = [8, 8], strides = [1, 1]} : vector<16x96xf32> to vector<8x8xf32>
    %110 = vector.extract_strided_slice %86 {offsets = [8, 48], sizes = [8, 8], strides = [1, 1]} : vector<16x96xf32> to vector<8x8xf32>
    %111 = vector.extract_strided_slice %86 {offsets = [8, 56], sizes = [8, 8], strides = [1, 1]} : vector<16x96xf32> to vector<8x8xf32>
    %112 = vector.shape_cast %104 : vector<8x8xf32> to vector<1x8x8xf32>
    %113 = vector.shape_cast %105 : vector<8x8xf32> to vector<1x8x8xf32>
    %114 = vector.shape_cast %106 : vector<8x8xf32> to vector<1x8x8xf32>
    %115 = vector.shape_cast %107 : vector<8x8xf32> to vector<1x8x8xf32>
    %116 = vector.shape_cast %108 : vector<8x8xf32> to vector<1x8x8xf32>
    %117 = vector.shape_cast %109 : vector<8x8xf32> to vector<1x8x8xf32>
    %118 = vector.shape_cast %110 : vector<8x8xf32> to vector<1x8x8xf32>
    %119 = vector.shape_cast %111 : vector<8x8xf32> to vector<1x8x8xf32>
    %120 = tpu.concatenate %112, %113, %114, %115, %116, %117, %118, %119 in 0 : vector<1x8x8xf32>, vector<1x8x8xf32>, vector<1x8x8xf32>, vector<1x8x8xf32>, vector<1x8x8xf32>, vector<1x8x8xf32>, vector<1x8x8xf32>, vector<1x8x8xf32> -> vector<8x8x8xf32>
    %121 = vector.extract_strided_slice %86 {offsets = [0, 64], sizes = [8, 8], strides = [1, 1]} : vector<16x96xf32> to vector<8x8xf32>
    %122 = vector.extract_strided_slice %86 {offsets = [0, 72], sizes = [8, 8], strides = [1, 1]} : vector<16x96xf32> to vector<8x8xf32>
    %123 = vector.extract_strided_slice %86 {offsets = [0, 80], sizes = [8, 8], strides = [1, 1]} : vector<16x96xf32> to vector<8x8xf32>
    %124 = vector.extract_strided_slice %86 {offsets = [0, 88], sizes = [8, 8], strides = [1, 1]} : vector<16x96xf32> to vector<8x8xf32>
    %125 = vector.extract_strided_slice %86 {offsets = [8, 64], sizes = [8, 8], strides = [1, 1]} : vector<16x96xf32> to vector<8x8xf32>
    %126 = vector.extract_strided_slice %86 {offsets = [8, 72], sizes = [8, 8], strides = [1, 1]} : vector<16x96xf32> to vector<8x8xf32>
    %127 = vector.extract_strided_slice %86 {offsets = [8, 80], sizes = [8, 8], strides = [1, 1]} : vector<16x96xf32> to vector<8x8xf32>
    %128 = vector.extract_strided_slice %86 {offsets = [8, 88], sizes = [8, 8], strides = [1, 1]} : vector<16x96xf32> to vector<8x8xf32>
    %129 = vector.shape_cast %121 : vector<8x8xf32> to vector<1x8x8xf32>
    %130 = vector.shape_cast %122 : vector<8x8xf32> to vector<1x8x8xf32>
    %131 = vector.shape_cast %123 : vector<8x8xf32> to vector<1x8x8xf32>
    %132 = vector.shape_cast %124 : vector<8x8xf32> to vector<1x8x8xf32>
    %133 = vector.shape_cast %125 : vector<8x8xf32> to vector<1x8x8xf32>
    %134 = vector.shape_cast %126 : vector<8x8xf32> to vector<1x8x8xf32>
    %135 = vector.shape_cast %127 : vector<8x8xf32> to vector<1x8x8xf32>
    %136 = vector.shape_cast %128 : vector<8x8xf32> to vector<1x8x8xf32>
    %137 = tpu.concatenate %129, %130, %131, %132, %133, %134, %135, %136 in 0 : vector<1x8x8xf32>, vector<1x8x8xf32>, vector<1x8x8xf32>, vector<1x8x8xf32>, vector<1x8x8xf32>, vector<1x8x8xf32>, vector<1x8x8xf32>, vector<1x8x8xf32> -> vector<8x8x8xf32>
    "tpu.trace_start"() <{level = 10 : i32, message = "bqd,bkd->bqk"}> : () -> ()
    %cst_30 = arith.constant dense<0.000000e+00> : vector<8x8x8xf32>
    %138 = tpu.matmul %103, %120, %cst_30 {dimension_numbers = #tpu.dot_dimension_numbers<[2], [2], [1], [1], [0, 0, 0, 1, 1, 1], [0], [0]>} : vector<8x8x8xf32>, vector<8x8x8xf32>, vector<8x8x8xf32> -> vector<8x8x8xf32>
    "tpu.trace_stop"() : () -> ()
    %139 = arith.addf %138, %74 : vector<8x8x8xf32>
    %cst_31 = arith.constant dense<0xFF800000> : vector<8x8xf32>
    %140 = vector.multi_reduction <maximumf>, %139, %cst_31 [2] : vector<8x8x8xf32> to vector<8x8xf32>
    %141 = vector.shape_cast %140 : vector<8x8xf32> to vector<8x8x1xf32>
    %142 = vector.broadcast %141 : vector<8x8x1xf32> to vector<8x8x8xf32>
    %143 = arith.subf %139, %142 : vector<8x8x8xf32>
    %144 = math.exp %143 : vector<8x8x8xf32>
    %cst_32 = arith.constant dense<0.000000e+00> : vector<8x8xf32>
    %145 = vector.multi_reduction <add>, %144, %cst_32 [2] : vector<8x8x8xf32> to vector<8x8xf32>
    %146 = vector.shape_cast %145 : vector<8x8xf32> to vector<8x8x1xf32>
    %147 = tpu.reciprocal %146 {approx = true} : vector<8x8x1xf32> -> vector<8x8x1xf32>
    %148 = vector.broadcast %147 : vector<8x8x1xf32> to vector<8x8x8xf32>
    %149 = arith.mulf %144, %148 : vector<8x8x8xf32>
    "tpu.trace_start"() <{level = 10 : i32, message = "bqk,bkd->bqd"}> : () -> ()
    %cst_33 = arith.constant dense<0.000000e+00> : vector<8x8x8xf32>
    %150 = tpu.matmul %149, %137, %cst_33 {dimension_numbers = #tpu.dot_dimension_numbers<[2], [1], [1], [2], [0, 0, 0, 1, 1, 2], [0], [0]>} : vector<8x8x8xf32>, vector<8x8x8xf32>, vector<8x8x8xf32> -> vector<8x8x8xf32>
    "tpu.trace_stop"() : () -> ()
    %151 = vector.extract_strided_slice %150 {offsets = [0, 0, 0], sizes = [1, 8, 8], strides = [1, 1, 1]} : vector<8x8x8xf32> to vector<1x8x8xf32>
    %152 = vector.shape_cast %151 : vector<1x8x8xf32> to vector<8x8xf32>
    %153 = vector.extract_strided_slice %150 {offsets = [1, 0, 0], sizes = [1, 8, 8], strides = [1, 1, 1]} : vector<8x8x8xf32> to vector<1x8x8xf32>
    %154 = vector.shape_cast %153 : vector<1x8x8xf32> to vector<8x8xf32>
    %155 = vector.extract_strided_slice %150 {offsets = [2, 0, 0], sizes = [1, 8, 8], strides = [1, 1, 1]} : vector<8x8x8xf32> to vector<1x8x8xf32>
    %156 = vector.shape_cast %155 : vector<1x8x8xf32> to vector<8x8xf32>
    %157 = vector.extract_strided_slice %150 {offsets = [3, 0, 0], sizes = [1, 8, 8], strides = [1, 1, 1]} : vector<8x8x8xf32> to vector<1x8x8xf32>
    %158 = vector.shape_cast %157 : vector<1x8x8xf32> to vector<8x8xf32>
    %159 = tpu.concatenate %152, %154, %156, %158 in 1 : vector<8x8xf32>, vector<8x8xf32>, vector<8x8xf32>, vector<8x8xf32> -> vector<8x32xf32>
    %160 = vector.extract_strided_slice %150 {offsets = [4, 0, 0], sizes = [1, 8, 8], strides = [1, 1, 1]} : vector<8x8x8xf32> to vector<1x8x8xf32>
    %161 = vector.shape_cast %160 : vector<1x8x8xf32> to vector<8x8xf32>
    %162 = vector.extract_strided_slice %150 {offsets = [5, 0, 0], sizes = [1, 8, 8], strides = [1, 1, 1]} : vector<8x8x8xf32> to vector<1x8x8xf32>
    %163 = vector.shape_cast %162 : vector<1x8x8xf32> to vector<8x8xf32>
    %164 = vector.extract_strided_slice %150 {offsets = [6, 0, 0], sizes = [1, 8, 8], strides = [1, 1, 1]} : vector<8x8x8xf32> to vector<1x8x8xf32>
    %165 = vector.shape_cast %164 : vector<1x8x8xf32> to vector<8x8xf32>
    %166 = vector.extract_strided_slice %150 {offsets = [7, 0, 0], sizes = [1, 8, 8], strides = [1, 1, 1]} : vector<8x8x8xf32> to vector<1x8x8xf32>
    %167 = vector.shape_cast %166 : vector<1x8x8xf32> to vector<8x8xf32>
    %168 = tpu.concatenate %161, %163, %165, %167 in 1 : vector<8x8xf32>, vector<8x8xf32>, vector<8x8xf32>, vector<8x8xf32> -> vector<8x32xf32>
    %169 = tpu.concatenate %159, %168 in 0 : vector<8x32xf32>, vector<8x32xf32> -> vector<16x32xf32>
    %cst_34 = arith.constant dense<0.000000e+00> : vector<16x32xf32>
    %170 = tpu.matmul %169, %78, %cst_34 {dimension_numbers = #tpu.dot_dimension_numbers<[1], [0], [0], [1], [0, 0, 1, 1], [], []>} : vector<16x32xf32>, vector<32x32xf32>, vector<16x32xf32> -> vector<16x32xf32>
    %c3 = arith.constant 3 : index
    %c0_35 = arith.constant 0 : index
    %171 = vector.load %arg4[%c3, %c0_35] : memref<24x128xf32, #tpu.memory_space<vmem>>, vector<1x32xf32>
    %172 = vector.broadcast %171 : vector<1x32xf32> to vector<16x32xf32>
    %173 = arith.addf %170, %172 : vector<16x32xf32>
    %174 = arith.addf %35, %173 : vector<16x32xf32>
    %c4 = arith.constant 4 : index
    %c0_36 = arith.constant 0 : index
    %175 = vector.load %arg4[%c4, %c0_36] : memref<24x128xf32, #tpu.memory_space<vmem>>, vector<1x32xf32>
    %c5 = arith.constant 5 : index
    %c0_37 = arith.constant 0 : index
    %176 = vector.load %arg4[%c5, %c0_37] : memref<24x128xf32, #tpu.memory_space<vmem>>, vector<1x32xf32>
    %cst_38 = arith.constant dense<0.000000e+00> : vector<16xf32>
    %177 = vector.multi_reduction <add>, %174, %cst_38 [1] : vector<16x32xf32> to vector<16xf32>
    %178 = vector.shape_cast %177 : vector<16xf32> to vector<16x1xf32>
    %cst_39 = arith.constant 3.200000e+01 : f32
    %179 = vector.broadcast %cst_39 : f32 to vector<16x1xf32>
    %180 = arith.divf %178, %179 : vector<16x1xf32>
    %181 = vector.broadcast %180 : vector<16x1xf32> to vector<16x32xf32>
    %182 = arith.subf %174, %181 : vector<16x32xf32>
    %183 = arith.mulf %182, %182 : vector<16x32xf32>
    %cst_40 = arith.constant dense<0.000000e+00> : vector<16xf32>
    %184 = vector.multi_reduction <add>, %183, %cst_40 [1] : vector<16x32xf32> to vector<16xf32>
    %185 = vector.shape_cast %184 : vector<16xf32> to vector<16x1xf32>
    %cst_41 = arith.constant 3.200000e+01 : f32
    %186 = vector.broadcast %cst_41 : f32 to vector<16x1xf32>
    %187 = arith.divf %185, %186 : vector<16x1xf32>
    %188 = vector.broadcast %180 : vector<16x1xf32> to vector<16x32xf32>
    %189 = arith.subf %174, %188 : vector<16x32xf32>
    %cst_42 = arith.constant 9.99999996E-13 : f32
    %190 = vector.broadcast %cst_42 : f32 to vector<16x1xf32>
    %191 = arith.addf %187, %190 : vector<16x1xf32>
    %192 = math.rsqrt %191 : vector<16x1xf32>
    %193 = vector.broadcast %192 : vector<16x1xf32> to vector<16x32xf32>
    %194 = arith.mulf %189, %193 : vector<16x32xf32>
    %195 = vector.broadcast %175 : vector<1x32xf32> to vector<16x32xf32>
    %196 = arith.mulf %194, %195 : vector<16x32xf32>
    %197 = vector.broadcast %176 : vector<1x32xf32> to vector<16x32xf32>
    %198 = arith.addf %196, %197 : vector<16x32xf32>
    %cst_43 = arith.constant dense<0.000000e+00> : vector<16x64xf32>
    %199 = tpu.matmul %198, %80, %cst_43 {dimension_numbers = #tpu.dot_dimension_numbers<[1], [0], [0], [1], [0, 0, 1, 1], [], []>} : vector<16x32xf32>, vector<32x64xf32>, vector<16x64xf32> -> vector<16x64xf32>
    %c6 = arith.constant 6 : index
    %c0_44 = arith.constant 0 : index
    %200 = vector.load %arg4[%c6, %c0_44] : memref<24x128xf32, #tpu.memory_space<vmem>>, vector<1x64xf32>
    %201 = vector.broadcast %200 : vector<1x64xf32> to vector<16x64xf32>
    %202 = arith.addf %199, %201 : vector<16x64xf32>
    %203 = arith.mulf %202, %202 : vector<16x64xf32>
    %204 = arith.mulf %202, %203 : vector<16x64xf32>
    %cst_45 = arith.constant 4.471500e-02 : f32
    %205 = vector.broadcast %cst_45 : f32 to vector<16x64xf32>
    %206 = arith.mulf %205, %204 : vector<16x64xf32>
    %207 = arith.addf %202, %206 : vector<16x64xf32>
    %cst_46 = arith.constant 0.797884583 : f32
    %208 = vector.broadcast %cst_46 : f32 to vector<16x64xf32>
    %209 = arith.mulf %208, %207 : vector<16x64xf32>
    %210 = math.tanh %209 : vector<16x64xf32>
    %cst_47 = arith.constant 1.000000e+00 : f32
    %211 = vector.broadcast %cst_47 : f32 to vector<16x64xf32>
    %212 = arith.addf %211, %210 : vector<16x64xf32>
    %cst_48 = arith.constant 5.000000e-01 : f32
    %213 = vector.broadcast %cst_48 : f32 to vector<16x64xf32>
    %214 = arith.mulf %213, %212 : vector<16x64xf32>
    %215 = arith.mulf %202, %214 : vector<16x64xf32>
    %cst_49 = arith.constant dense<0.000000e+00> : vector<16x32xf32>
    %216 = tpu.matmul %215, %82, %cst_49 {dimension_numbers = #tpu.dot_dimension_numbers<[1], [0], [0], [1], [0, 0, 1, 1], [], []>} : vector<16x64xf32>, vector<64x32xf32>, vector<16x32xf32> -> vector<16x32xf32>
    %c7 = arith.constant 7 : index
    %c0_50 = arith.constant 0 : index
    %217 = vector.load %arg4[%c7, %c0_50] : memref<24x128xf32, #tpu.memory_space<vmem>>, vector<1x32xf32>
    %218 = vector.broadcast %217 : vector<1x32xf32> to vector<16x32xf32>
    %219 = arith.addf %216, %218 : vector<16x32xf32>
    %220 = arith.addf %198, %219 : vector<16x32xf32>
    %c8 = arith.constant 8 : index
    %c0_51 = arith.constant 0 : index
    %221 = vector.load %arg4[%c8, %c0_51] : memref<24x128xf32, #tpu.memory_space<vmem>>, vector<1x32xf32>
    %c9 = arith.constant 9 : index
    %c0_52 = arith.constant 0 : index
    %222 = vector.load %arg4[%c9, %c0_52] : memref<24x128xf32, #tpu.memory_space<vmem>>, vector<1x32xf32>
    %cst_53 = arith.constant dense<0.000000e+00> : vector<16xf32>
    %223 = vector.multi_reduction <add>, %220, %cst_53 [1] : vector<16x32xf32> to vector<16xf32>
    %224 = vector.shape_cast %223 : vector<16xf32> to vector<16x1xf32>
    %cst_54 = arith.constant 3.200000e+01 : f32
    %225 = vector.broadcast %cst_54 : f32 to vector<16x1xf32>
    %226 = arith.divf %224, %225 : vector<16x1xf32>
    %227 = vector.broadcast %226 : vector<16x1xf32> to vector<16x32xf32>
    %228 = arith.subf %220, %227 : vector<16x32xf32>
    %229 = arith.mulf %228, %228 : vector<16x32xf32>
    %cst_55 = arith.constant dense<0.000000e+00> : vector<16xf32>
    %230 = vector.multi_reduction <add>, %229, %cst_55 [1] : vector<16x32xf32> to vector<16xf32>
    %231 = vector.shape_cast %230 : vector<16xf32> to vector<16x1xf32>
    %cst_56 = arith.constant 3.200000e+01 : f32
    %232 = vector.broadcast %cst_56 : f32 to vector<16x1xf32>
    %233 = arith.divf %231, %232 : vector<16x1xf32>
    %234 = vector.broadcast %226 : vector<16x1xf32> to vector<16x32xf32>
    %235 = arith.subf %220, %234 : vector<16x32xf32>
    %cst_57 = arith.constant 9.99999996E-13 : f32
    %236 = vector.broadcast %cst_57 : f32 to vector<16x1xf32>
    %237 = arith.addf %233, %236 : vector<16x1xf32>
    %238 = math.rsqrt %237 : vector<16x1xf32>
    %239 = vector.broadcast %238 : vector<16x1xf32> to vector<16x32xf32>
    %240 = arith.mulf %235, %239 : vector<16x32xf32>
    %241 = vector.broadcast %221 : vector<1x32xf32> to vector<16x32xf32>
    %242 = arith.mulf %240, %241 : vector<16x32xf32>
    %243 = vector.broadcast %222 : vector<1x32xf32> to vector<16x32xf32>
    %244 = arith.addf %242, %243 : vector<16x32xf32>
    %c1_58 = arith.constant 1 : index
    %c0_59 = arith.constant 0 : index
    %c0_60 = arith.constant 0 : index
    %245 = vector.load %arg3[%c1_58, %c0_59, %c0_60] : memref<3x64x256xf32, #tpu.memory_space<vmem>>, vector<1x32x96xf32>
    %246 = vector.shape_cast %245 : vector<1x32x96xf32> to vector<32x96xf32>
    %c1_61 = arith.constant 1 : index
    %c0_62 = arith.constant 0 : index
    %c96_63 = arith.constant 96 : index
    %247 = vector.load %arg3[%c1_61, %c0_62, %c96_63] : memref<3x64x256xf32, #tpu.memory_space<vmem>>, vector<1x32x32xf32>
    %248 = vector.shape_cast %247 : vector<1x32x32xf32> to vector<32x32xf32>
    %c1_64 = arith.constant 1 : index
    %c0_65 = arith.constant 0 : index
    %c128_66 = arith.constant 128 : index
    %249 = vector.load %arg3[%c1_64, %c0_65, %c128_66] : memref<3x64x256xf32, #tpu.memory_space<vmem>>, vector<1x32x64xf32>
    %250 = vector.shape_cast %249 : vector<1x32x64xf32> to vector<32x64xf32>
    %c1_67 = arith.constant 1 : index
    %c0_68 = arith.constant 0 : index
    %c192_69 = arith.constant 192 : index
    %251 = vector.load %arg3[%c1_67, %c0_68, %c192_69] : memref<3x64x256xf32, #tpu.memory_space<vmem>>, vector<1x64x32xf32>
    %252 = vector.shape_cast %251 : vector<1x64x32xf32> to vector<64x32xf32>
    %cst_70 = arith.constant dense<0.000000e+00> : vector<16x96xf32>
    %253 = tpu.matmul %244, %246, %cst_70 {dimension_numbers = #tpu.dot_dimension_numbers<[1], [0], [0], [1], [0, 0, 1, 1], [], []>} : vector<16x32xf32>, vector<32x96xf32>, vector<16x96xf32> -> vector<16x96xf32>
    %c10 = arith.constant 10 : index
    %c0_71 = arith.constant 0 : index
    %254 = vector.load %arg4[%c10, %c0_71] : memref<24x128xf32, #tpu.memory_space<vmem>>, vector<1x96xf32>
    %255 = vector.broadcast %254 : vector<1x96xf32> to vector<16x96xf32>
    %256 = arith.addf %253, %255 : vector<16x96xf32>
    %257 = vector.extract_strided_slice %256 {offsets = [0, 0], sizes = [8, 8], strides = [1, 1]} : vector<16x96xf32> to vector<8x8xf32>
    %258 = vector.extract_strided_slice %256 {offsets = [0, 8], sizes = [8, 8], strides = [1, 1]} : vector<16x96xf32> to vector<8x8xf32>
    %259 = vector.extract_strided_slice %256 {offsets = [0, 16], sizes = [8, 8], strides = [1, 1]} : vector<16x96xf32> to vector<8x8xf32>
    %260 = vector.extract_strided_slice %256 {offsets = [0, 24], sizes = [8, 8], strides = [1, 1]} : vector<16x96xf32> to vector<8x8xf32>
    %261 = vector.extract_strided_slice %256 {offsets = [8, 0], sizes = [8, 8], strides = [1, 1]} : vector<16x96xf32> to vector<8x8xf32>
    %262 = vector.extract_strided_slice %256 {offsets = [8, 8], sizes = [8, 8], strides = [1, 1]} : vector<16x96xf32> to vector<8x8xf32>
    %263 = vector.extract_strided_slice %256 {offsets = [8, 16], sizes = [8, 8], strides = [1, 1]} : vector<16x96xf32> to vector<8x8xf32>
    %264 = vector.extract_strided_slice %256 {offsets = [8, 24], sizes = [8, 8], strides = [1, 1]} : vector<16x96xf32> to vector<8x8xf32>
    %265 = vector.shape_cast %257 : vector<8x8xf32> to vector<1x8x8xf32>
    %266 = vector.shape_cast %258 : vector<8x8xf32> to vector<1x8x8xf32>
    %267 = vector.shape_cast %259 : vector<8x8xf32> to vector<1x8x8xf32>
    %268 = vector.shape_cast %260 : vector<8x8xf32> to vector<1x8x8xf32>
    %269 = vector.shape_cast %261 : vector<8x8xf32> to vector<1x8x8xf32>
    %270 = vector.shape_cast %262 : vector<8x8xf32> to vector<1x8x8xf32>
    %271 = vector.shape_cast %263 : vector<8x8xf32> to vector<1x8x8xf32>
    %272 = vector.shape_cast %264 : vector<8x8xf32> to vector<1x8x8xf32>
    %273 = tpu.concatenate %265, %266, %267, %268, %269, %270, %271, %272 in 0 : vector<1x8x8xf32>, vector<1x8x8xf32>, vector<1x8x8xf32>, vector<1x8x8xf32>, vector<1x8x8xf32>, vector<1x8x8xf32>, vector<1x8x8xf32>, vector<1x8x8xf32> -> vector<8x8x8xf32>
    %274 = vector.extract_strided_slice %256 {offsets = [0, 32], sizes = [8, 8], strides = [1, 1]} : vector<16x96xf32> to vector<8x8xf32>
    %275 = vector.extract_strided_slice %256 {offsets = [0, 40], sizes = [8, 8], strides = [1, 1]} : vector<16x96xf32> to vector<8x8xf32>
    %276 = vector.extract_strided_slice %256 {offsets = [0, 48], sizes = [8, 8], strides = [1, 1]} : vector<16x96xf32> to vector<8x8xf32>
    %277 = vector.extract_strided_slice %256 {offsets = [0, 56], sizes = [8, 8], strides = [1, 1]} : vector<16x96xf32> to vector<8x8xf32>
    %278 = vector.extract_strided_slice %256 {offsets = [8, 32], sizes = [8, 8], strides = [1, 1]} : vector<16x96xf32> to vector<8x8xf32>
    %279 = vector.extract_strided_slice %256 {offsets = [8, 40], sizes = [8, 8], strides = [1, 1]} : vector<16x96xf32> to vector<8x8xf32>
    %280 = vector.extract_strided_slice %256 {offsets = [8, 48], sizes = [8, 8], strides = [1, 1]} : vector<16x96xf32> to vector<8x8xf32>
    %281 = vector.extract_strided_slice %256 {offsets = [8, 56], sizes = [8, 8], strides = [1, 1]} : vector<16x96xf32> to vector<8x8xf32>
    %282 = vector.shape_cast %274 : vector<8x8xf32> to vector<1x8x8xf32>
    %283 = vector.shape_cast %275 : vector<8x8xf32> to vector<1x8x8xf32>
    %284 = vector.shape_cast %276 : vector<8x8xf32> to vector<1x8x8xf32>
    %285 = vector.shape_cast %277 : vector<8x8xf32> to vector<1x8x8xf32>
    %286 = vector.shape_cast %278 : vector<8x8xf32> to vector<1x8x8xf32>
    %287 = vector.shape_cast %279 : vector<8x8xf32> to vector<1x8x8xf32>
    %288 = vector.shape_cast %280 : vector<8x8xf32> to vector<1x8x8xf32>
    %289 = vector.shape_cast %281 : vector<8x8xf32> to vector<1x8x8xf32>
    %290 = tpu.concatenate %282, %283, %284, %285, %286, %287, %288, %289 in 0 : vector<1x8x8xf32>, vector<1x8x8xf32>, vector<1x8x8xf32>, vector<1x8x8xf32>, vector<1x8x8xf32>, vector<1x8x8xf32>, vector<1x8x8xf32>, vector<1x8x8xf32> -> vector<8x8x8xf32>
    %291 = vector.extract_strided_slice %256 {offsets = [0, 64], sizes = [8, 8], strides = [1, 1]} : vector<16x96xf32> to vector<8x8xf32>
    %292 = vector.extract_strided_slice %256 {offsets = [0, 72], sizes = [8, 8], strides = [1, 1]} : vector<16x96xf32> to vector<8x8xf32>
    %293 = vector.extract_strided_slice %256 {offsets = [0, 80], sizes = [8, 8], strides = [1, 1]} : vector<16x96xf32> to vector<8x8xf32>
    %294 = vector.extract_strided_slice %256 {offsets = [0, 88], sizes = [8, 8], strides = [1, 1]} : vector<16x96xf32> to vector<8x8xf32>
    %295 = vector.extract_strided_slice %256 {offsets = [8, 64], sizes = [8, 8], strides = [1, 1]} : vector<16x96xf32> to vector<8x8xf32>
    %296 = vector.extract_strided_slice %256 {offsets = [8, 72], sizes = [8, 8], strides = [1, 1]} : vector<16x96xf32> to vector<8x8xf32>
    %297 = vector.extract_strided_slice %256 {offsets = [8, 80], sizes = [8, 8], strides = [1, 1]} : vector<16x96xf32> to vector<8x8xf32>
    %298 = vector.extract_strided_slice %256 {offsets = [8, 88], sizes = [8, 8], strides = [1, 1]} : vector<16x96xf32> to vector<8x8xf32>
    %299 = vector.shape_cast %291 : vector<8x8xf32> to vector<1x8x8xf32>
    %300 = vector.shape_cast %292 : vector<8x8xf32> to vector<1x8x8xf32>
    %301 = vector.shape_cast %293 : vector<8x8xf32> to vector<1x8x8xf32>
    %302 = vector.shape_cast %294 : vector<8x8xf32> to vector<1x8x8xf32>
    %303 = vector.shape_cast %295 : vector<8x8xf32> to vector<1x8x8xf32>
    %304 = vector.shape_cast %296 : vector<8x8xf32> to vector<1x8x8xf32>
    %305 = vector.shape_cast %297 : vector<8x8xf32> to vector<1x8x8xf32>
    %306 = vector.shape_cast %298 : vector<8x8xf32> to vector<1x8x8xf32>
    %307 = tpu.concatenate %299, %300, %301, %302, %303, %304, %305, %306 in 0 : vector<1x8x8xf32>, vector<1x8x8xf32>, vector<1x8x8xf32>, vector<1x8x8xf32>, vector<1x8x8xf32>, vector<1x8x8xf32>, vector<1x8x8xf32>, vector<1x8x8xf32> -> vector<8x8x8xf32>
    "tpu.trace_start"() <{level = 10 : i32, message = "bqd,bkd->bqk"}> : () -> ()
    %cst_72 = arith.constant dense<0.000000e+00> : vector<8x8x8xf32>
    %308 = tpu.matmul %273, %290, %cst_72 {dimension_numbers = #tpu.dot_dimension_numbers<[2], [2], [1], [1], [0, 0, 0, 1, 1, 1], [0], [0]>} : vector<8x8x8xf32>, vector<8x8x8xf32>, vector<8x8x8xf32> -> vector<8x8x8xf32>
    "tpu.trace_stop"() : () -> ()
    %309 = arith.addf %308, %74 : vector<8x8x8xf32>
    %cst_73 = arith.constant dense<0xFF800000> : vector<8x8xf32>
    %310 = vector.multi_reduction <maximumf>, %309, %cst_73 [2] : vector<8x8x8xf32> to vector<8x8xf32>
    %311 = vector.shape_cast %310 : vector<8x8xf32> to vector<8x8x1xf32>
    %312 = vector.broadcast %311 : vector<8x8x1xf32> to vector<8x8x8xf32>
    %313 = arith.subf %309, %312 : vector<8x8x8xf32>
    %314 = math.exp %313 : vector<8x8x8xf32>
    %cst_74 = arith.constant dense<0.000000e+00> : vector<8x8xf32>
    %315 = vector.multi_reduction <add>, %314, %cst_74 [2] : vector<8x8x8xf32> to vector<8x8xf32>
    %316 = vector.shape_cast %315 : vector<8x8xf32> to vector<8x8x1xf32>
    %317 = tpu.reciprocal %316 {approx = true} : vector<8x8x1xf32> -> vector<8x8x1xf32>
    %318 = vector.broadcast %317 : vector<8x8x1xf32> to vector<8x8x8xf32>
    %319 = arith.mulf %314, %318 : vector<8x8x8xf32>
    "tpu.trace_start"() <{level = 10 : i32, message = "bqk,bkd->bqd"}> : () -> ()
    %cst_75 = arith.constant dense<0.000000e+00> : vector<8x8x8xf32>
    %320 = tpu.matmul %319, %307, %cst_75 {dimension_numbers = #tpu.dot_dimension_numbers<[2], [1], [1], [2], [0, 0, 0, 1, 1, 2], [0], [0]>} : vector<8x8x8xf32>, vector<8x8x8xf32>, vector<8x8x8xf32> -> vector<8x8x8xf32>
    "tpu.trace_stop"() : () -> ()
    %321 = vector.extract_strided_slice %320 {offsets = [0, 0, 0], sizes = [1, 8, 8], strides = [1, 1, 1]} : vector<8x8x8xf32> to vector<1x8x8xf32>
    %322 = vector.shape_cast %321 : vector<1x8x8xf32> to vector<8x8xf32>
    %323 = vector.extract_strided_slice %320 {offsets = [1, 0, 0], sizes = [1, 8, 8], strides = [1, 1, 1]} : vector<8x8x8xf32> to vector<1x8x8xf32>
    %324 = vector.shape_cast %323 : vector<1x8x8xf32> to vector<8x8xf32>
    %325 = vector.extract_strided_slice %320 {offsets = [2, 0, 0], sizes = [1, 8, 8], strides = [1, 1, 1]} : vector<8x8x8xf32> to vector<1x8x8xf32>
    %326 = vector.shape_cast %325 : vector<1x8x8xf32> to vector<8x8xf32>
    %327 = vector.extract_strided_slice %320 {offsets = [3, 0, 0], sizes = [1, 8, 8], strides = [1, 1, 1]} : vector<8x8x8xf32> to vector<1x8x8xf32>
    %328 = vector.shape_cast %327 : vector<1x8x8xf32> to vector<8x8xf32>
    %329 = tpu.concatenate %322, %324, %326, %328 in 1 : vector<8x8xf32>, vector<8x8xf32>, vector<8x8xf32>, vector<8x8xf32> -> vector<8x32xf32>
    %330 = vector.extract_strided_slice %320 {offsets = [4, 0, 0], sizes = [1, 8, 8], strides = [1, 1, 1]} : vector<8x8x8xf32> to vector<1x8x8xf32>
    %331 = vector.shape_cast %330 : vector<1x8x8xf32> to vector<8x8xf32>
    %332 = vector.extract_strided_slice %320 {offsets = [5, 0, 0], sizes = [1, 8, 8], strides = [1, 1, 1]} : vector<8x8x8xf32> to vector<1x8x8xf32>
    %333 = vector.shape_cast %332 : vector<1x8x8xf32> to vector<8x8xf32>
    %334 = vector.extract_strided_slice %320 {offsets = [6, 0, 0], sizes = [1, 8, 8], strides = [1, 1, 1]} : vector<8x8x8xf32> to vector<1x8x8xf32>
    %335 = vector.shape_cast %334 : vector<1x8x8xf32> to vector<8x8xf32>
    %336 = vector.extract_strided_slice %320 {offsets = [7, 0, 0], sizes = [1, 8, 8], strides = [1, 1, 1]} : vector<8x8x8xf32> to vector<1x8x8xf32>
    %337 = vector.shape_cast %336 : vector<1x8x8xf32> to vector<8x8xf32>
    %338 = tpu.concatenate %331, %333, %335, %337 in 1 : vector<8x8xf32>, vector<8x8xf32>, vector<8x8xf32>, vector<8x8xf32> -> vector<8x32xf32>
    %339 = tpu.concatenate %329, %338 in 0 : vector<8x32xf32>, vector<8x32xf32> -> vector<16x32xf32>
    %cst_76 = arith.constant dense<0.000000e+00> : vector<16x32xf32>
    %340 = tpu.matmul %339, %248, %cst_76 {dimension_numbers = #tpu.dot_dimension_numbers<[1], [0], [0], [1], [0, 0, 1, 1], [], []>} : vector<16x32xf32>, vector<32x32xf32>, vector<16x32xf32> -> vector<16x32xf32>
    %c11 = arith.constant 11 : index
    %c0_77 = arith.constant 0 : index
    %341 = vector.load %arg4[%c11, %c0_77] : memref<24x128xf32, #tpu.memory_space<vmem>>, vector<1x32xf32>
    %342 = vector.broadcast %341 : vector<1x32xf32> to vector<16x32xf32>
    %343 = arith.addf %340, %342 : vector<16x32xf32>
    %344 = arith.addf %244, %343 : vector<16x32xf32>
    %c12 = arith.constant 12 : index
    %c0_78 = arith.constant 0 : index
    %345 = vector.load %arg4[%c12, %c0_78] : memref<24x128xf32, #tpu.memory_space<vmem>>, vector<1x32xf32>
    %c13 = arith.constant 13 : index
    %c0_79 = arith.constant 0 : index
    %346 = vector.load %arg4[%c13, %c0_79] : memref<24x128xf32, #tpu.memory_space<vmem>>, vector<1x32xf32>
    %cst_80 = arith.constant dense<0.000000e+00> : vector<16xf32>
    %347 = vector.multi_reduction <add>, %344, %cst_80 [1] : vector<16x32xf32> to vector<16xf32>
    %348 = vector.shape_cast %347 : vector<16xf32> to vector<16x1xf32>
    %cst_81 = arith.constant 3.200000e+01 : f32
    %349 = vector.broadcast %cst_81 : f32 to vector<16x1xf32>
    %350 = arith.divf %348, %349 : vector<16x1xf32>
    %351 = vector.broadcast %350 : vector<16x1xf32> to vector<16x32xf32>
    %352 = arith.subf %344, %351 : vector<16x32xf32>
    %353 = arith.mulf %352, %352 : vector<16x32xf32>
    %cst_82 = arith.constant dense<0.000000e+00> : vector<16xf32>
    %354 = vector.multi_reduction <add>, %353, %cst_82 [1] : vector<16x32xf32> to vector<16xf32>
    %355 = vector.shape_cast %354 : vector<16xf32> to vector<16x1xf32>
    %cst_83 = arith.constant 3.200000e+01 : f32
    %356 = vector.broadcast %cst_83 : f32 to vector<16x1xf32>
    %357 = arith.divf %355, %356 : vector<16x1xf32>
    %358 = vector.broadcast %350 : vector<16x1xf32> to vector<16x32xf32>
    %359 = arith.subf %344, %358 : vector<16x32xf32>
    %cst_84 = arith.constant 9.99999996E-13 : f32
    %360 = vector.broadcast %cst_84 : f32 to vector<16x1xf32>
    %361 = arith.addf %357, %360 : vector<16x1xf32>
    %362 = math.rsqrt %361 : vector<16x1xf32>
    %363 = vector.broadcast %362 : vector<16x1xf32> to vector<16x32xf32>
    %364 = arith.mulf %359, %363 : vector<16x32xf32>
    %365 = vector.broadcast %345 : vector<1x32xf32> to vector<16x32xf32>
    %366 = arith.mulf %364, %365 : vector<16x32xf32>
    %367 = vector.broadcast %346 : vector<1x32xf32> to vector<16x32xf32>
    %368 = arith.addf %366, %367 : vector<16x32xf32>
    %cst_85 = arith.constant dense<0.000000e+00> : vector<16x64xf32>
    %369 = tpu.matmul %368, %250, %cst_85 {dimension_numbers = #tpu.dot_dimension_numbers<[1], [0], [0], [1], [0, 0, 1, 1], [], []>} : vector<16x32xf32>, vector<32x64xf32>, vector<16x64xf32> -> vector<16x64xf32>
    %c14 = arith.constant 14 : index
    %c0_86 = arith.constant 0 : index
    %370 = vector.load %arg4[%c14, %c0_86] : memref<24x128xf32, #tpu.memory_space<vmem>>, vector<1x64xf32>
    %371 = vector.broadcast %370 : vector<1x64xf32> to vector<16x64xf32>
    %372 = arith.addf %369, %371 : vector<16x64xf32>
    %373 = arith.mulf %372, %372 : vector<16x64xf32>
    %374 = arith.mulf %372, %373 : vector<16x64xf32>
    %cst_87 = arith.constant 4.471500e-02 : f32
    %375 = vector.broadcast %cst_87 : f32 to vector<16x64xf32>
    %376 = arith.mulf %375, %374 : vector<16x64xf32>
    %377 = arith.addf %372, %376 : vector<16x64xf32>
    %cst_88 = arith.constant 0.797884583 : f32
    %378 = vector.broadcast %cst_88 : f32 to vector<16x64xf32>
    %379 = arith.mulf %378, %377 : vector<16x64xf32>
    %380 = math.tanh %379 : vector<16x64xf32>
    %cst_89 = arith.constant 1.000000e+00 : f32
    %381 = vector.broadcast %cst_89 : f32 to vector<16x64xf32>
    %382 = arith.addf %381, %380 : vector<16x64xf32>
    %cst_90 = arith.constant 5.000000e-01 : f32
    %383 = vector.broadcast %cst_90 : f32 to vector<16x64xf32>
    %384 = arith.mulf %383, %382 : vector<16x64xf32>
    %385 = arith.mulf %372, %384 : vector<16x64xf32>
    %cst_91 = arith.constant dense<0.000000e+00> : vector<16x32xf32>
    %386 = tpu.matmul %385, %252, %cst_91 {dimension_numbers = #tpu.dot_dimension_numbers<[1], [0], [0], [1], [0, 0, 1, 1], [], []>} : vector<16x64xf32>, vector<64x32xf32>, vector<16x32xf32> -> vector<16x32xf32>
    %c15 = arith.constant 15 : index
    %c0_92 = arith.constant 0 : index
    %387 = vector.load %arg4[%c15, %c0_92] : memref<24x128xf32, #tpu.memory_space<vmem>>, vector<1x32xf32>
    %388 = vector.broadcast %387 : vector<1x32xf32> to vector<16x32xf32>
    %389 = arith.addf %386, %388 : vector<16x32xf32>
    %390 = arith.addf %368, %389 : vector<16x32xf32>
    %c16 = arith.constant 16 : index
    %c0_93 = arith.constant 0 : index
    %391 = vector.load %arg4[%c16, %c0_93] : memref<24x128xf32, #tpu.memory_space<vmem>>, vector<1x32xf32>
    %c17 = arith.constant 17 : index
    %c0_94 = arith.constant 0 : index
    %392 = vector.load %arg4[%c17, %c0_94] : memref<24x128xf32, #tpu.memory_space<vmem>>, vector<1x32xf32>
    %cst_95 = arith.constant dense<0.000000e+00> : vector<16xf32>
    %393 = vector.multi_reduction <add>, %390, %cst_95 [1] : vector<16x32xf32> to vector<16xf32>
    %394 = vector.shape_cast %393 : vector<16xf32> to vector<16x1xf32>
    %cst_96 = arith.constant 3.200000e+01 : f32
    %395 = vector.broadcast %cst_96 : f32 to vector<16x1xf32>
    %396 = arith.divf %394, %395 : vector<16x1xf32>
    %397 = vector.broadcast %396 : vector<16x1xf32> to vector<16x32xf32>
    %398 = arith.subf %390, %397 : vector<16x32xf32>
    %399 = arith.mulf %398, %398 : vector<16x32xf32>
    %cst_97 = arith.constant dense<0.000000e+00> : vector<16xf32>
    %400 = vector.multi_reduction <add>, %399, %cst_97 [1] : vector<16x32xf32> to vector<16xf32>
    %401 = vector.shape_cast %400 : vector<16xf32> to vector<16x1xf32>
    %cst_98 = arith.constant 3.200000e+01 : f32
    %402 = vector.broadcast %cst_98 : f32 to vector<16x1xf32>
    %403 = arith.divf %401, %402 : vector<16x1xf32>
    %404 = vector.broadcast %396 : vector<16x1xf32> to vector<16x32xf32>
    %405 = arith.subf %390, %404 : vector<16x32xf32>
    %cst_99 = arith.constant 9.99999996E-13 : f32
    %406 = vector.broadcast %cst_99 : f32 to vector<16x1xf32>
    %407 = arith.addf %403, %406 : vector<16x1xf32>
    %408 = math.rsqrt %407 : vector<16x1xf32>
    %409 = vector.broadcast %408 : vector<16x1xf32> to vector<16x32xf32>
    %410 = arith.mulf %405, %409 : vector<16x32xf32>
    %411 = vector.broadcast %391 : vector<1x32xf32> to vector<16x32xf32>
    %412 = arith.mulf %410, %411 : vector<16x32xf32>
    %413 = vector.broadcast %392 : vector<1x32xf32> to vector<16x32xf32>
    %414 = arith.addf %412, %413 : vector<16x32xf32>
    %415 = vector.extract_strided_slice %414 {offsets = [0, 0], sizes = [1, 32], strides = [1, 1]} : vector<16x32xf32> to vector<1x32xf32>
    %416 = vector.extract_strided_slice %414 {offsets = [8, 0], sizes = [1, 32], strides = [1, 1]} : vector<16x32xf32> to vector<1x32xf32>
    %417 = tpu.concatenate %415, %416 in 0 : vector<1x32xf32>, vector<1x32xf32> -> vector<2x32xf32>
    %c2_100 = arith.constant 2 : index
    %c0_101 = arith.constant 0 : index
    %c0_102 = arith.constant 0 : index
    %418 = vector.load %arg3[%c2_100, %c0_101, %c0_102] : memref<3x64x256xf32, #tpu.memory_space<vmem>>, vector<1x32x32xf32>
    %419 = vector.shape_cast %418 : vector<1x32x32xf32> to vector<32x32xf32>
    %c2_103 = arith.constant 2 : index
    %c0_104 = arith.constant 0 : index
    %c128_105 = arith.constant 128 : index
    %420 = vector.load %arg3[%c2_103, %c0_104, %c128_105] : memref<3x64x256xf32, #tpu.memory_space<vmem>>, vector<1x32x128xf32>
    %421 = vector.shape_cast %420 : vector<1x32x128xf32> to vector<32x128xf32>
    %cst_106 = arith.constant dense<0.000000e+00> : vector<2x32xf32>
    %422 = tpu.matmul %417, %419, %cst_106 {dimension_numbers = #tpu.dot_dimension_numbers<[1], [0], [0], [1], [0, 0, 1, 1], [], []>} : vector<2x32xf32>, vector<32x32xf32>, vector<2x32xf32> -> vector<2x32xf32>
    %c18 = arith.constant 18 : index
    %c0_107 = arith.constant 0 : index
    %423 = vector.load %arg4[%c18, %c0_107] : memref<24x128xf32, #tpu.memory_space<vmem>>, vector<1x32xf32>
    %424 = vector.broadcast %423 : vector<1x32xf32> to vector<2x32xf32>
    %425 = arith.addf %422, %424 : vector<2x32xf32>
    %426 = math.tanh %425 : vector<2x32xf32>
    %cst_108 = arith.constant dense<0.000000e+00> : vector<2x128xf32>
    %427 = tpu.matmul %426, %421, %cst_108 {dimension_numbers = #tpu.dot_dimension_numbers<[1], [0], [0], [1], [0, 0, 1, 1], [], []>} : vector<2x32xf32>, vector<32x128xf32>, vector<2x128xf32> -> vector<2x128xf32>
    %c19 = arith.constant 19 : index
    %c0_109 = arith.constant 0 : index
    %428 = vector.load %arg4[%c19, %c0_109] : memref<24x128xf32, #tpu.memory_space<vmem>>, vector<1x128xf32>
    %429 = vector.broadcast %428 : vector<1x128xf32> to vector<2x128xf32>
    %430 = arith.addf %427, %429 : vector<2x128xf32>
    %c0_110 = arith.constant 0 : index
    %c0_111 = arith.constant 0 : index
    %431 = vector.load %arg5[%c0_110, %c0_111] : memref<2x128xf32, #tpu.memory_space<vmem>>, vector<2x128xf32>
    tpu.vector_store %arg5[%c0_110, %c0_111], %430 {strides = array<i32>} : memref<2x128xf32, #tpu.memory_space<vmem>>, vector<2x128xf32>,
    return
  }
}

</mosaic_0001>

<bundles_post_ra>
// kernel: forward.1
= control target key start
LH: loop header
LB: loop body
LE: loop exit
PB: predicated region body
PF: predicated region fallthrough
CT: control target
= control target key end

     0   :  { %10 = vsyncpa [#allocation3], 0  ;;  %s5696_s0 = inlined_call_operand.vmem [shape: s32[16,1], index: 0, kind: input, shape index: {}]   ;;  %s5697_s1 = inlined_call_operand.vmem [shape: s32[2,8], index: 1, kind: input, shape index: {}]   ;;  %s5698_s2 = inlined_call_operand.vmem [shape: f32[144,32], index: 2, kind: input, shape index: {}]   ;;  %s5699_s3 = inlined_call_operand.hbm [shape: f32[3,64,256], index: 3, kind: input, shape index: {}]   ;;  %s5700_s4 = inlined_call_operand.vmem [shape: f32[24,128], index: 4, kind: input, shape index: {}]   ;;  %s5701_s5 = inlined_call_operand.hbm [shape: f32[2,128], index: 5, kind: output, shape index: {}]  }
   0x1   :  { %11 = vsyncpa [#allocation4], 0  ;;  %s4996_s18 = smov [#allocation2]   ;;  %s4948_s22 = scalar_lea.hbm %s5699_s3, 6144 }
   0x2   :  { %s23_s19 = sshll.u32 %s4996_s18, 4  ;;  %p4949_p0 = scmp.ne.s32.totalorder %s5699_s3, %s4948_s22  ;;  %s24_s19 = int_to_ptr.vmem [resolvable:$true] %s23_s19 }
   0x3   :  { %p4952_p1 = scmp.lt.u32.totalorder %s4948_s22, %s5699_s3 }
   0x5   :  { %p4954_p2 = pnand %p4952_p1, %p4949_p0 }
   0x7   :  { %4957 = shalt.err (!%p4954_p2)
}
   0x8   :  { %s4958_s27 = scalar_lea.vmem %s24_s19, 6144  ;;  %p4963_p4 = scmp.lt.s32.totalorder %s24_s19, %s24_s19 }
   0x9   :  { %p4959_p3 = scmp.ne.s32.totalorder %s24_s19, %s4958_s27  ;;  %p4964_p5 = scmp.lt.s32.totalorder %s4958_s27, %s4958_s27 }
   0xb   :  { %p4965_p6 = por %p4964_p5, %p4963_p4 }
   0xd   :  { %p4966_p7 = pnand %p4965_p6, %p4959_p3 }
   0xf   :  { %4969 = shalt.err (!%p4966_p7)
}
  0x10   :  { %s4997_s28 = smov 256   ;;  %s4998_s29 = smov 16  }
  0x11   :  { %29 = dma.hbm_to_vmem [thread:$0]  %s5699_s3, 6144, %s24_s19, [#allocation3], %s4997_s28, %s4997_s28, %s4998_s29  }
  0x12   :  { %4992 = dma.done.wait [#allocation3], 6144  }
  0x13   :  { %4993 = vsyncadd [#allocation3], 4294961152  ;;  %v4999_v0 = vmov 0   ;;  %v35_v1 = vld [vmem:[%s5696_s0] sm:$0xff]  ;;  %v50_v3 = vld [vmem:[%s5698_s2 + $0x8] sm:$0xff]  ;;  %v37_v11 = vlaneseq  ;;  %v5000_v37 = vmov 1.0  }
  0x14   :  { %4793 = vset.pattern.permute.xlu0 %v4999_v0  ;;  %v49_v2 = vld [vmem:[%s5698_s2] sm:$0xff]  ;;  %v51_v4 = vld [vmem:[%s5698_s2 + $0x10] sm:$0xff]  ;;  %v52_v5 = vld [vmem:[%s5698_s2 + $0x18] sm:$0xff]  ;;  %vm143_vm2 = vcmask 261120   ;;  %s5002_s24 = smov 120   ;;  %s5003_s25 = smov 96  }
  0x15   :  { %40 = vperm.xlu0 %4793, %v35_v1   ;;  %v36_v6 = vld [vmem:[%s5696_s0 + $0x8] sm:$0xff]  ;;  %v4652_v7 = vpack.c.bf16 %v50_v3, %v49_v2  ;;  %v4656_v8 = vpack.c.bf16 %v52_v5, %v51_v4  ;;  %v53_v9 = vld [vmem:[%s5698_s2 + $0x20] sm:$0xff]  ;;  %v55_v14 = vld [vmem:[%s5698_s2 + $0x30] sm:$0xff]  ;;  %v5089_v17 = vshrl.u32 %v37_v11, 7  ;;  %v38_v35 = vand.u32 127, %v37_v11  ;;  %s5001_s0 = smov 112  }
  0x16   :  { %v54_v10 = vld [vmem:[%s5698_s2 + $0x28] sm:$0xff]  ;;  %v183_v13 = vld [vmem:[%s5697_s1] sm:$0x3]  ;;  %v56_v15 = vld [vmem:[%s5698_s2 + $0x38] sm:$0xff]  ;;  %s5005_s26 = smov 104   ;;  %vm5006_vm3 = vmmov 0  }
  0x17   :  { %4653 = vmatprep.subr.bf16.mxu0 %v4652_v7  ;;  %v4660_v12 = vpack.c.bf16 %v54_v10, %v53_v9  ;;  %v184_v16 = vcvt.s32.f32 %v183_v13  ;;  %v193_v19 = vsub.s32 1, %v5089_v17  ;;  %v4664_v20 = vpack.c.bf16 %v56_v15, %v55_v14  ;;  %v57_v21 = vld [vmem:[%s5698_s2 + $0x40] sm:$0xff]  ;;  %v58_v22 = vld [vmem:[%s5698_s2 + $0x48] sm:$0xff]  ;;  %v59_v26 = vld [vmem:[%s5698_s2 + $0x50] sm:$0xff]  ;;  %s5007_s27 = smov 64   ;;  %s5008_s28 = smov 32  }
  0x18   :  { %4655 = vmatpush3.bf16.msra.mxu0 %v4652_v7  ;;  %v4668_v25 = vpack.c.bf16 %v58_v22, %v57_v21  ;;  %v60_v27 = vld [vmem:[%s5698_s2 + $0x58] sm:$0xff]  ;;  %v61_v29 = vld [vmem:[%s5698_s2 + $0x60] sm:$0xff]  ;;  %v62_v30 = vld [vmem:[%s5698_s2 + $0x68] sm:$0xff]  ;;  %v5004_v21 = vmov 0.0   ;;  %vm309_vm4 = vcmask 64512   ;;  %s5009_s1 = smov 8  }
  0x19   :  { %43 = vperm.xlu0 %4793, %v36_v6   ;;  %4657 = vmatprep.subr.bf16.mxu0 %v4656_v8  ;;  %v185_v18 = vsub.f32 1.0, %v184_v16  ;;  %v4672_v28 = vpack.c.bf16 %v60_v27, %v59_v26  ;;  %v4676_v31 = vpack.c.bf16 %v62_v30, %v61_v29  ;;  %v63_v32 = vld [vmem:[%s5698_s2 + $0x70] sm:$0xff]  ;;  %v64_v33 = vld [vmem:[%s5698_s2 + $0x78] sm:$0xff]  ;;  %v65_v39 = vld [vmem:[%s5698_s2 + $0x80] sm:$0xff]  ;;  %s5010_s30 = smov 24   ;;  %vm1625_vm5 = vcmask 130048  }
  0x1a   :  { %v4680_v34 = vpack.c.bf16 %v64_v33, %v63_v32  ;;  %v5128_v56 = vld [vmem:[#allocation2] sm:$0xff]  ;;  %v5130_v57 = vld [vmem:[#allocation2 + $0x10] sm:$0xff]  ;;  %vm1627_vm6 = vcmask 195584   ;;  %vm1929_vm7 = vcmask 523264   ;;  %vm3911_vm8 = vcmask 1040384   ;;  %s5012_s11 = smov [#allocation5]  }
  0x1b   :  { %v5098_v23 = vmul.f32 -10000.0, %v185_v18  ;;  %v5132_v58 = vld [vmem:[#allocation2 + $0x20] sm:$0xff]  ;;  %v4794_v59 = vpack.i.bf16 %v5130_v57, %v5128_v56  ;;  %v4684_v60 = vpack.c.bf16 %v5130_v57, %v5128_v56  ;;  %v5138_v61 = vld [vmem:[#allocation2 + $0x30] sm:$0xff]  ;;  %s4086_s12 = sshll.u32 %s5012_s11, 4  ;;  %s4087_s12 = int_to_ptr.vmem [resolvable:$true] %s4086_s12 }
  0x1c   :  { %4659 = vmatpush3.bf16.msra.mxu0 %v4656_v8  ;;  %v4688_v62 = vpack.c.bf16 %v5138_v61, %v5132_v58  ;;  %v4097_v6 = vld [vmem:[%s5700_s4] ss:$0 sm:$0xff]  ;;  %v4098_v8 = vld [vmem:[%s5700_s4 + $0x1] ss:$0 sm:$0xff]  ;;  %v4099_v15 = vld [vmem:[%s5700_s4 + $0x2] ss:$0 sm:$0xff]  ;;  %p4975_p9 = scmp.lt.s32.totalorder %s4087_s12, %s4087_s12 }
  0x1d   :  { %4661 = vmatprep.subr.bf16.mxu0 %v4660_v12  ;;  %v5101_v24 = vrot.slane %v5098_v23, %v193_v19  ;;  %4685 = vmatprep.subr.bf16.mxu1 %v4684_v60  ;;  %s4970_s13 = scalar_lea.vmem %s4087_s12, 32 }
  0x1e   :  { %4687 = vmatpush3.bf16.msra.mxu1 %v4684_v60  ;;  %p4971_p8 = scmp.ne.s32.totalorder %s4087_s12, %s4970_s13  ;;  %p4976_p10 = scmp.lt.s32.totalorder %s4970_s13, %s4970_s13 }
  0x1f   :  { %4689 = vmatprep.subr.bf16.mxu1 %v4688_v62 }
  0x20   :  { %4663 = vmatpush3.bf16.msra.mxu0 %v4660_v12  ;;  %p4977_p11 = por %p4976_p10, %p4975_p9 }
  0x21   :  { %4665 = vmatprep.subr.bf16.mxu0 %v4664_v20 }
  0x22   :  { %4691 = vmatpush3.bf16.msra.mxu1 %v4688_v62  ;;  %p4978_p12 = pnand %p4977_p11, %p4971_p8 }
  0x23   :  { %4377 = vmatprep.subr.mxu1 %v5004_v21 }
  0x24   :  { %4667 = vmatpush3.bf16.msra.mxu0 %v4664_v20 }
  0x25   :  { %4669 = vmatprep.subr.bf16.mxu0 %v4668_v25 }
  0x28   :  { %4671 = vmatpush3.bf16.msra.mxu0 %v4668_v25 }
  0x29   :  { %4673 = vmatprep.subr.bf16.mxu0 %v4672_v28 }
  0x2c   :  { %4675 = vmatpush3.bf16.msra.mxu0 %v4672_v28 }
  0x2d   :  { %4677 = vmatprep.subr.bf16.mxu0 %v4676_v31 }
  0x30   :  { %4679 = vmatpush3.bf16.msra.mxu0 %v4676_v31 }
  0x31   :  { %4681 = vmatprep.subr.bf16.mxu0 %v4680_v34 }
  0x34   :  { %4683 = vmatpush3.bf16.msra.mxu0 %v4680_v34 }
  0x35   :  { %4407 = vmatprep.subr.mxu0 %v5004_v21 }
  0x94   :  { %v41_v36 = vpop.permute.xlu0 %40 }
  0x95   :  { %vm45_vm0 = vcmp.eq.s32.totalorder %v38_v35, %v41_v36 }
  0x96   :  { %4363 = vmatprep.mubr.msk.f32.mxu0 %vm45_vm0, %v5000_v37 }
  0x98   :  { %v44_v38 = vpop.permute.xlu0 %43 }
  0x99   :  { %vm46_vm1 = vcmp.eq.s32.totalorder %v38_v35, %v44_v38  ;;  %v189_v38 = vsub.s32 0, %v5089_v17 }
  0x9a   :  { %4364 = vmatmul.mubr.msk.f32.vlgmr.msra.gmra.mrb[0].mxu0 %vm46_vm1, %v5000_v37 }
  0x9b   :  { %4409 = vmatprep.mubr.msk.f32.mxu0 %vm5006_vm3, %v5004_v21 }
 0x16d   :  { %v4365_v40 = vpop.f32.mrb[0].mxu0 }
 0x16e   :  { %v132_v41 = vpop.f32.mrb[1].mxu0  ;;  %v138_v43 = vadd.f32 %v4365_v40, %v65_v39 }
 0x16f   :  { %v133_v42 = vadd.f32 %v132_v41, %v65_v39  ;;  %v5259_v39 = vrot.slane %v5098_v23, %v189_v38 }
 0x170   :  { %v147_v45 = vsel %vm143_vm2, %v138_v43, 0.0 }
 0x171   :  { %v144_v44 = vsel %vm143_vm2, %v133_v42, 0.0 }
 0x172   :  { %145 = vadd.xlane.f32.xlu1 %v144_v44 }
 0x176   :  { %148 = vadd.xlane.f32.xlu1 %v147_v45 }
 0x1ff   :  { %v146_v46 = vpop.xlane.xlu1 %145 }
 0x200   :  { %v151_v47 = vmul.f32 0.03125, %v146_v46 }
 0x202   :  { %v153_v48 = vsub.f32 %v133_v42, %v151_v47 }
 0x203   :  { %v149_v49 = vpop.xlane.xlu1 %148 }
 0x204   :  { %v152_v50 = vmul.f32 0.03125, %v149_v49  ;;  %v155_v51 = vmul.f32 %v153_v48, %v153_v48 }
 0x206   :  { %v154_v52 = vsub.f32 %v138_v43, %v152_v50  ;;  %v157_v53 = vsel %vm143_vm2, %v155_v51, 0.0 }
 0x207   :  { %158 = vadd.xlane.f32.xlu0 %v157_v53 }
 0x208   :  { %v156_v54 = vmul.f32 %v154_v52, %v154_v52 }
 0x20a   :  { %v160_v55 = vsel %vm143_vm2, %v156_v54, 0.0 }
 0x20b   :  { %161 = vadd.xlane.f32.xlu1 %v160_v55 }
 0x294   :  { %v159_v63 = vpop.xlane.xlu0 %158 }
 0x295   :  { %v163_v0 = vmul.f32 0.03125, %v159_v63 }
 0x297   :  { %v165_v1 = vadd.f32 1e-12, %v163_v0 }
 0x298   :  { %v162_v2 = vpop.xlane.xlu1 %161 }
 0x299   :  { %4854 = vrsqrt.f32 %v165_v1  ;;  %v164_v3 = vmul.f32 0.03125, %v162_v2 }
 0x29b   :  { %v166_v4 = vadd.f32 1e-12, %v164_v3 }
 0x29d   :  { %4856 = vrsqrt.f32 %v166_v4 }
 0x2a3   :  { %v4855_v5 = vpop.eup %4854 }
 0x2a4   :  { %v169_v7 = vmul.f32 %v4855_v5, %v153_v48 }
 0x2a6   :  { %v175_v9 = vmul.f32 %v4097_v6, %v169_v7 }
 0x2a7   :  { %v4857_v10 = vpop.eup %4856 }
 0x2a8   :  { %v170_v11 = vmul.f32 %v4857_v10, %v154_v52  ;;  %v5148_v12 = vadd.f32 %v4098_v8, %v175_v9 }
 0x2aa   :  { %v176_v13 = vmul.f32 %v4097_v6, %v170_v11  ;;  %4374 = vmatprep.mubr.msk.f32.mxu1 %vm143_vm2, %v5148_v12 }
 0x2ac   :  { %v5152_v14 = vadd.f32 %v4098_v8, %v176_v13 }
 0x2ae   :  { %4375 = vmatmul.mubr.msk.f32.vlgmr.msra.gmra.mrb[0].mxu1 %vm143_vm2, %v5152_v14 }
 0x2af   :  { %4379 = vmatprep.mubr.msk.f32.mxu1 %vm5006_vm3, %v5004_v21 }
 0x381   :  { %v4376_v16 = vpop.f32.mrb[0].mxu1 }
 0x382   :  { %v5159_v18 = vadd.f32 %v4376_v16, %v4099_v15  ;;  %v284_v19 = vpop.f32.mrb[1].mxu1 }
 0x383   :  { %v5161_v20 = vadd.f32 %v4099_v15, %v284_v19 }
 0x384   :  { %303 = vrot.lane.b32.xlu0 %v5159_v18, %s5001_s0 }
 0x385   :  { %294 = vrot.lane.b32.xlu1 %v5161_v20, %s5002_s24 }
 0x388   :  { %612 = vrot.lane.b32.xlu0 %v5159_v18, %s5003_s25 }
 0x389   :  { %296 = vrot.lane.b32.xlu1 %v5161_v20, %s5001_s0 }
 0x38d   :  { %298 = vrot.lane.b32.xlu1 %v5161_v20, %s5005_s26 }
 0x391   :  { %301 = vrot.lane.b32.xlu1 %v5159_v18, %s5002_s24 }
 0x395   :  { %305 = vrot.lane.b32.xlu1 %v5159_v18, %s5005_s26 }
 0x399   :  { %307 = vrot.lane.b32.xlu1 %v5161_v20, %s5003_s25 }
 0x3f6   :  { %v5185_v22 = vpop.permute.xlu0 %303 }
 0x3f7   :  { %764 = vrot.lane.b32.xlu0 %v5185_v22, %s5003_s25  ;;  %v5189_v25 = vpop.permute.xlu1 %294 }
 0x3f8   :  { %384 = vrot.lane.b32.xlu1 %v5189_v25, %s5003_s25 }
 0x3fa   :  { %v613_v31 = vpop.permute.xlu0 %612 }
 0x3fb   :  { %v5193_v26 = vpop.permute.xlu1 %296 }
 0x3fc   :  { %460 = vrot.lane.b32.xlu1 %v5193_v26, %s5003_s25 }
 0x3ff   :  { %v5197_v27 = vpop.permute.xlu1 %298 }
 0x400   :  { %536 = vrot.lane.b32.xlu1 %v5197_v27, %s5003_s25 }
 0x403   :  { %v5201_v28 = vpop.permute.xlu1 %301 }
 0x404   :  { %688 = vrot.lane.b32.xlu1 %v5201_v28, %s5003_s25 }
 0x407   :  { %v5205_v29 = vpop.permute.xlu1 %305 }
 0x408   :  { %840 = vrot.lane.b32.xlu1 %v5205_v29, %s5003_s25 }
 0x40b   :  { %v308_v30 = vpop.permute.xlu1 %307 }
 0x40c   :  { %4378 = vmatpush3.xpose.msk.msra.mxu1 %vm309_vm4, %v308_v30 }
 0x40d   :  { %4382 = vmatprep.subr.mxu1 %v5004_v21 }
 0x40f   :  { %4380 = vmatmul.mubr.msk.f32.vlgmr.msra.gmra.mrb[2].mxu1 %vm309_vm4, %v5161_v20 }
 0x410   :  { %4384 = vmatprep.mubr.msk.f32.mxu1 %vm5006_vm3, %v5004_v21 }
 0x469   :  { %v765_v32 = vpop.permute.xlu0 %764 }
 0x46a   :  { %4408 = vmatpush3.xpose.msk.msra.mxu0 %vm309_vm4, %v765_v32  ;;  %v385_v33 = vpop.permute.xlu1 %384 }
 0x46b   :  { %4383 = vmatpush3.xpose.msk.msra.mxu1 %vm309_vm4, %v385_v33  ;;  %4417 = vmatprep.subr.mxu0 %v5004_v21 }
 0x46c   :  { %4387 = vmatprep.subr.mxu1 %v5004_v21 }
 0x46d   :  { %4410 = vmatmul.mubr.msk.f32.vlgmr.msra.gmra.mrb[2].mxu0 %vm309_vm4, %v5185_v22 }
 0x46e   :  { %4385 = vmatmul.mubr.msk.f32.vlgmr.msra.gmra.mrb[4].mxu1 %vm309_vm4, %v5189_v25  ;;  %v461_v34 = vpop.permute.xlu1 %460  ;;  %4419 = vmatprep.mubr.msk.f32.mxu0 %vm5006_vm3, %v5004_v21 }
 0x46f   :  { %4388 = vmatpush3.xpose.msk.msra.mxu1 %vm309_vm4, %v461_v34  ;;  %4389 = vmatprep.mubr.msk.f32.mxu1 %vm5006_vm3, %v5004_v21 }
 0x470   :  { %4392 = vmatprep.subr.mxu1 %v5004_v21 }
 0x472   :  { %4390 = vmatmul.mubr.msk.f32.vlgmr.msra.gmra.mrb[6].mxu1 %vm309_vm4, %v5193_v26  ;;  %v537_v35 = vpop.permute.xlu1 %536 }
 0x473   :  { %4393 = vmatpush3.xpose.msk.msra.mxu1 %vm309_vm4, %v537_v35  ;;  %4394 = vmatprep.mubr.msk.f32.mxu1 %vm5006_vm3, %v5004_v21 }
 0x474   :  { %4397 = vmatprep.subr.mxu1 %v5004_v21 }
 0x476   :  { %4395 = vmatmul.mubr.msk.f32.vlgmr.msra.gmra.mrb[8].mxu1 %vm309_vm4, %v5197_v27  ;;  %v689_v36 = vpop.permute.xlu1 %688 }
 0x477   :  { %4398 = vmatpush3.xpose.msk.msra.mxu1 %vm309_vm4, %v613_v31  ;;  %4399 = vmatprep.mubr.msk.f32.mxu1 %vm5006_vm3, %v5004_v21 }
 0x478   :  { %4402 = vmatprep.subr.mxu1 %v5004_v21 }
 0x47a   :  { %4400 = vmatmul.mubr.msk.f32.vlgmr.msra.gmra.mrb[10].mxu1 %vm309_vm4, %v5159_v18  ;;  %v841_v37 = vpop.permute.xlu1 %840 }
 0x47b   :  { %4403 = vmatpush3.xpose.msk.msra.mxu1 %vm309_vm4, %v689_v36  ;;  %4404 = vmatprep.mubr.msk.f32.mxu1 %vm5006_vm3, %v5004_v21 }
 0x47c   :  { %4412 = vmatprep.subr.mxu1 %v5004_v21 }
 0x47e   :  { %4405 = vmatmul.mubr.msk.f32.vlgmr.msra.gmra.mrb[12].mxu1 %vm309_vm4, %v5201_v28 }
 0x47f   :  { %4413 = vmatpush3.xpose.msk.msra.mxu1 %vm309_vm4, %v841_v37  ;;  %4414 = vmatprep.mubr.msk.f32.mxu1 %vm5006_vm3, %v5004_v21 }
 0x480   :  { %4422 = vmatprep.subr.mxu1 %v5004_v21 }
 0x482   :  { %4415 = vmatmul.mubr.msk.f32.vlgmr.msra.gmra.mrb[14].mxu1 %vm309_vm4, %v5205_v29 }
 0x483   :  { %4424 = vmatprep.mubr.msk.f32.mxu1 %vm5006_vm3, %v5004_v21 }
 0x4e2   :  { %v380_v40 = vpop.f32.mrb[2].mxu1 }
 0x4e3   :  { %v381_v41 = vadd.f32 %v380_v40, %v5259_v39  ;;  %v4381_v42 = vpop.f32.mrb[3].mxu1 }
 0x4e5   :  { %v916_v43 = vsel %vm309_vm4, %v381_v41, -inf }
 0x4e6   :  { %917 = vmax.xlane.f32.xlu0 %v916_v43 }
 0x540   :  { %v836_v44 = vpop.f32.mrb[2].mxu0 }
 0x541   :  { %v456_v45 = vpop.f32.mrb[4].mxu1  ;;  %v4411_v46 = vpop.f32.mrb[3].mxu0  ;;  %v837_v0 = vadd.f32 %v836_v44, %v5101_v24 }
 0x542   :  { %v457_v47 = vadd.f32 %v456_v45, %v5259_v39  ;;  %v4386_v48 = vpop.f32.mrb[5].mxu1 }
 0x543   :  { %v934_v5 = vsel %vm309_vm4, %v837_v0, -inf }
 0x544   :  { %v919_v49 = vsel %vm309_vm4, %v457_v47, -inf }
 0x545   :  { %920 = vmax.xlane.f32.xlu1 %v919_v49  ;;  %v532_v17 = vpop.f32.mrb[6].mxu1 }
 0x546   :  { %v533_v23 = vadd.f32 %v532_v17, %v5259_v39  ;;  %v4391_v50 = vpop.f32.mrb[7].mxu1 }
 0x548   :  { %v922_v51 = vsel %vm309_vm4, %v533_v23, -inf }
 0x549   :  { %923 = vmax.xlane.f32.xlu0 %v922_v51  ;;  %v608_v52 = vpop.f32.mrb[8].mxu1 }
 0x54a   :  { %v609_v53 = vadd.f32 %v608_v52, %v5259_v39  ;;  %v4396_v54 = vpop.f32.mrb[9].mxu1 }
 0x54c   :  { %v925_v55 = vsel %vm309_vm4, %v609_v53, -inf }
 0x54d   :  { %926 = vmax.xlane.f32.xlu0 %v925_v55  ;;  %v684_v60 = vpop.f32.mrb[10].mxu1 }
 0x54e   :  { %v5270_v62 = vadd.f32 %v684_v60, %v5101_v24  ;;  %v4401_v63 = vpop.f32.mrb[11].mxu1 }
 0x550   :  { %v928_v1 = vsel %vm309_vm4, %v5270_v62, -inf }
 0x551   :  { %929 = vmax.xlane.f32.xlu1 %v928_v1  ;;  %v760_v2 = vpop.f32.mrb[12].mxu1 }
 0x552   :  { %v761_v3 = vadd.f32 %v760_v2, %v5101_v24  ;;  %v4406_v4 = vpop.f32.mrb[13].mxu1 }
 0x554   :  { %v931_v6 = vsel %vm309_vm4, %v761_v3, -inf }
 0x555   :  { %935 = vmax.xlane.f32.xlu1 %v934_v5  ;;  %932 = vmax.xlane.f32.xlu0 %v931_v6  ;;  %v912_v7 = vpop.f32.mrb[14].mxu1 }
 0x556   :  { %v913_v8 = vadd.f32 %v912_v7, %v5101_v24  ;;  %v4416_v9 = vpop.f32.mrb[15].mxu1 }
 0x558   :  { %v937_v10 = vsel %vm309_vm4, %v913_v8, -inf }
 0x559   :  { %938 = vmax.xlane.f32.xlu0 %v937_v10 }
 0x566   :  { %1004 = vrot.lane.b32.xlu1 %v5161_v20, %s5007_s27 }
 0x56a   :  { %1156 = vrot.lane.b32.xlu1 %v5193_v26, %s5007_s27 }
 0x56e   :  { %1232 = vrot.lane.b32.xlu1 %v5197_v27, %s5007_s27 }
 0x56f   :  { %1080 = vrot.lane.b32.xlu0 %v5189_v25, %s5007_s27 }
 0x572   :  { %1384 = vrot.lane.b32.xlu1 %v5201_v28, %s5007_s27 }
 0x573   :  { %1308 = vrot.lane.b32.xlu0 %v5159_v18, %s5007_s27  ;;  %v918_v11 = vpop.xlane.xlu0 %917 }
 0x574   :  { %v940_v13 = vsub.f32 %v381_v41, %v918_v11 }
 0x576   :  { %v948_v15 = vmul.f32 1.442695, %v940_v13 }
 0x578   :  { %4858 = vpow2.f32 %v948_v15 }
 0x582   :  { %v5292_v16 = vpop.eup %4858 }
 0x583   :  { %v964_v19 = vsel %vm309_vm4, %v5292_v16, 0.0 }
 0x596   :  { %965 = vadd.xlane.f32.xlu1 %v964_v19 }
 0x5d2   :  { %v921_v20 = vpop.xlane.xlu1 %920 }
 0x5d3   :  { %v941_v26 = vsub.f32 %v457_v47, %v921_v20 }
 0x5d5   :  { %v950_v27 = vmul.f32 1.442695, %v941_v26 }
 0x5d6   :  { %v924_v25 = vpop.xlane.xlu0 %923 }
 0x5d7   :  { %4860 = vpow2.f32 %v950_v27  ;;  %v942_v33 = vsub.f32 %v533_v23, %v924_v25 }
 0x5d9   :  { %v952_v42 = vmul.f32 1.442695, %v942_v33 }
 0x5da   :  { %v927_v30 = vpop.xlane.xlu0 %926 }
 0x5db   :  { %v943_v28 = vsub.f32 %v609_v53, %v927_v30 }
 0x5dd   :  { %v954_v31 = vmul.f32 1.442695, %v943_v28 }
 0x5de   :  { %v930_v32 = vpop.xlane.xlu1 %929 }
 0x5df   :  { %4862 = vpow2.f32 %v954_v31  ;;  %v944_v43 = vsub.f32 %v5270_v62, %v930_v32 }
 0x5e1   :  { %v5296_v18 = vpop.eup %4860  ;;  %v956_v49 = vmul.f32 1.442695, %v944_v43 }
 0x5e2   :  { %v933_v34 = vpop.xlane.xlu0 %932  ;;  %v936_v35 = vpop.xlane.xlu1 %935  ;;  %v967_v36 = vsel %vm309_vm4, %v5296_v18, 0.0 }
 0x5e3   :  { %v945_v37 = vsub.f32 %v761_v3, %v933_v34  ;;  %v946_v38 = vsub.f32 %v837_v0, %v936_v35  ;;  %968 = vadd.xlane.f32.xlu0 %v967_v36  ;;  %v4799_v34 = vpack.i.bf16 %v5138_v61, %v5132_v58 }
 0x5e5   :  { %v958_v40 = vmul.f32 1.442695, %v945_v37  ;;  %v960_v41 = vmul.f32 1.442695, %v946_v38 }
 0x5e6   :  { %v939_v44 = vpop.xlane.xlu0 %938  ;;  %v1005_v45 = vpop.permute.xlu1 %1004 }
 0x5e7   :  { %4864 = vpow2.f32 %v958_v40  ;;  %v947_v46 = vsub.f32 %v913_v8, %v939_v44  ;;  %4418 = vmatpush3.msra.mxu0 %v1005_v45 }
 0x5e8   :  { %4866 = vpow2.f32 %v960_v41  ;;  %4427 = vmatprep.subr.mxu0 %v5004_v21 }
 0x5e9   :  { %v4863_v47 = vpop.eup %4862  ;;  %v962_v48 = vmul.f32 1.442695, %v947_v46  ;;  %4868 = vpow2.f32 %v952_v42 }
 0x5ea   :  { %v1081_v17 = vpop.permute.xlu0 %1080  ;;  %v973_v23 = vsel %vm309_vm4, %v4863_v47, 0.0  ;;  %v1157_v1 = vpop.permute.xlu1 %1156 }
 0x5eb   :  { %4870 = vpow2.f32 %v962_v48  ;;  %4423 = vmatpush3.msra.mxu1 %v1081_v17  ;;  %974 = vadd.xlane.f32.xlu0 %v973_v23 }
 0x5ec   :  { %4432 = vmatprep.subr.mxu1 %v5004_v21  ;;  %4872 = vpow2.f32 %v956_v49 }
 0x5ee   :  { %v1233_v2 = vpop.permute.xlu1 %1232 }
 0x5f1   :  { %v4865_v50 = vpop.eup %4864 }
 0x5f2   :  { %v5304_v51 = vpop.eup %4866  ;;  %v979_v52 = vsel %vm309_vm4, %v4865_v50, 0.0  ;;  %v1385_v3 = vpop.permute.xlu1 %1384 }
 0x5f3   :  { %980 = vadd.xlane.f32.xlu0 %v979_v52  ;;  %v982_v53 = vsel %vm309_vm4, %v5304_v51, 0.0  ;;  %v4869_v54 = vpop.eup %4868 }
 0x5f4   :  { %983 = vadd.xlane.f32.xlu1 %v982_v53  ;;  %v970_v62 = vsel %vm309_vm4, %v4869_v54, 0.0 }
 0x5f5   :  { %v4871_v55 = vpop.eup %4870 }
 0x5f6   :  { %v985_v60 = vsel %vm309_vm4, %v4871_v55, 0.0  ;;  %v4873_v63 = vpop.eup %4872 }
 0x5f7   :  { %986 = vadd.xlane.f32.xlu0 %v985_v60  ;;  %v976_v0 = vsel %vm309_vm4, %v4873_v63, 0.0 }
 0x5f8   :  { %971 = vadd.xlane.f32.xlu1 %v970_v62 }
 0x5fc   :  { %977 = vadd.xlane.f32.xlu1 %v976_v0 }
 0x60d   :  { %1536 = vrot.lane.b32.xlu1 %v5205_v29, %s5007_s27  ;;  %1460 = vrot.lane.b32.xlu0 %v5185_v22, %s5007_s27  ;;  %v1309_v29 = vpop.permute.xlu0 %1308 }
 0x611   :  { %4795 = vrot.lane.b32.xlu0 %v4794_v59, %s5008_s28  ;;  %4800 = vrot.lane.b32.xlu1 %v4799_v34, %s5008_s28 }
 0x623   :  { %v966_v4 = vpop.xlane.xlu1 %965 }
 0x624   :  { %4874 = vrcp.f32 %v966_v4 }
 0x62e   :  { %v4875_v5 = vpop.eup %4874 }
 0x62f   :  { %v996_v6 = vmul.f32 %v4875_v5, %v5292_v16 }
 0x631   :  { %4420 = vmatmul.mubr.msk.f32.vlgmr.msra.gmra.mrb[4].mxu0 %vm309_vm4, %v996_v6 }
 0x632   :  { %4428 = vmatpush3.msra.mxu0 %v1157_v1  ;;  %4429 = vmatprep.mubr.msk.f32.mxu0 %vm5006_vm3, %v5004_v21 }
 0x633   :  { %4437 = vmatprep.subr.mxu0 %v5004_v21 }
 0x670   :  { %v969_v7 = vpop.xlane.xlu0 %968 }
 0x671   :  { %4876 = vrcp.f32 %v969_v7 }
 0x678   :  { %v975_v22 = vpop.xlane.xlu0 %974 }
 0x679   :  { %4878 = vrcp.f32 %v975_v22  ;;  %v4126_v22 = vld [vmem:[%s5700_s4 + $0x3] ss:$0 sm:$0xff] }
 0x67b   :  { %v4877_v8 = vpop.eup %4876 }
 0x67c   :  { %v997_v9 = vmul.f32 %v4877_v8, %v5296_v18 }
 0x67e   :  { %4425 = vmatmul.mubr.msk.f32.vlgmr.msra.gmra.mrb[16].mxu1 %vm309_vm4, %v997_v9 }
 0x67f   :  { %4433 = vmatpush3.msra.mxu1 %v1233_v2  ;;  %4434 = vmatprep.mubr.msk.f32.mxu1 %vm5006_vm3, %v5004_v21 }
 0x680   :  { %v981_v10 = vpop.xlane.xlu0 %980  ;;  %4442 = vmatprep.subr.mxu1 %v5004_v21 }
 0x681   :  { %4880 = vrcp.f32 %v981_v10  ;;  %v984_v11 = vpop.xlane.xlu1 %983 }
 0x683   :  { %v4879_v13 = vpop.eup %4878 }
 0x684   :  { %v999_v15 = vmul.f32 %v4879_v13, %v4863_v47  ;;  %v987_v16 = vpop.xlane.xlu0 %986 }
 0x685   :  { %4882 = vrcp.f32 %v987_v16  ;;  %v972_v19 = vpop.xlane.xlu1 %971 }
 0x686   :  { %4884 = vrcp.f32 %v972_v19  ;;  %4435 = vmatmul.mubr.msk.f32.vlgmr.msra.gmra.mrb[18].mxu1 %vm309_vm4, %v999_v15 }
 0x687   :  { %4443 = vmatpush3.msra.mxu1 %v1385_v3  ;;  %4444 = vmatprep.mubr.msk.f32.mxu1 %vm5006_vm3, %v5004_v21 }
 0x688   :  { %4452 = vmatprep.subr.mxu1 %v5004_v21  ;;  %v1461_v18 = vpop.permute.xlu0 %1460 }
 0x689   :  { %v978_v20 = vpop.xlane.xlu1 %977 }
 0x68a   :  { %4886 = vrcp.f32 %v978_v20 }
 0x68b   :  { %v4881_v26 = vpop.eup %4880  ;;  %4888 = vrcp.f32 %v984_v11 }
 0x68c   :  { %v1001_v27 = vmul.f32 %v4881_v26, %v4865_v50  ;;  %v4796_v35 = vpop.permute.xlu0 %4795 }
 0x68d   :  { %v1537_v25 = vpop.permute.xlu1 %1536  ;;  %v4798_v36 = vunpack.i.h.bf16 %v4796_v35  ;;  %v4797_v37 = vunpack.i.l.bf16 %v4796_v35 }
 0x68e   :  { %4445 = vmatmul.mubr.msk.f32.vlgmr.msra.gmra.mrb[20].mxu1 %vm309_vm4, %v1001_v27 }
 0x68f   :  { %v4883_v30 = vpop.eup %4882  ;;  %4453 = vmatpush3.msra.mxu1 %v1537_v25  ;;  %4454 = vmatprep.mubr.msk.f32.mxu1 %vm5006_vm3, %v5004_v21  ;;  %v4692_v38 = vpack.c.bf16 %v4798_v36, %v4797_v37  ;;  %v203_v37 = vld [vmem:[#allocation2 + $0x48] sm:$0xff] }
 0x690   :  { %v4885_v56 = vpop.eup %4884  ;;  %v1003_v57 = vmul.f32 %v4883_v30, %v4871_v55 }
 0x691   :  { %v998_v59 = vmul.f32 %v4885_v56, %v4869_v54  ;;  %v4801_v44 = vpop.permute.xlu1 %4800 }
 0x692   :  { %4455 = vmatmul.mubr.msk.f32.vlgmr.msra.gmra.mrb[22].mxu1 %vm309_vm4, %v1003_v57  ;;  %v4803_v45 = vunpack.i.h.bf16 %v4801_v44  ;;  %v4802_v46 = vunpack.i.l.bf16 %v4801_v44 }
 0x693   :  { %4430 = vmatmul.mubr.msk.f32.vlgmr.msra.gmra.mrb[6].mxu0 %vm309_vm4, %v998_v59 }
 0x694   :  { %v4887_v28 = vpop.eup %4886  ;;  %4438 = vmatpush3.msra.mxu0 %v1309_v29  ;;  %4439 = vmatprep.mubr.msk.f32.mxu0 %vm5006_vm3, %v5004_v21  ;;  %v4696_v47 = vpack.c.bf16 %v4803_v45, %v4802_v46 }
 0x695   :  { %v1000_v31 = vmul.f32 %v4887_v28, %v4873_v63  ;;  %4447 = vmatprep.subr.mxu0 %v5004_v21  ;;  %v4889_v32 = vpop.eup %4888 }
 0x696   :  { %v1002_v33 = vmul.f32 %v4889_v32, %v5304_v51 }
 0x697   :  { %4440 = vmatmul.mubr.msk.f32.vlgmr.msra.gmra.mrb[8].mxu0 %vm309_vm4, %v1000_v31  ;;  %v200_v31 = vld [vmem:[#allocation2 + $0x18] sm:$0xff] }
 0x698   :  { %4448 = vmatpush3.msra.mxu0 %v1461_v18  ;;  %4449 = vmatprep.mubr.msk.f32.mxu0 %vm5006_vm3, %v5004_v21  ;;  %v201_v18 = vld [vmem:[#allocation2 + $0x28] sm:$0xff] }
 0x699   :  { %4693 = vmatprep.subr.bf16.mxu0 %v4692_v38 }
 0x69b   :  { %4450 = vmatmul.mubr.msk.f32.vlgmr.msra.gmra.mrb[10].mxu0 %vm309_vm4, %v1002_v33  ;;  %v202_v33 = vld [vmem:[#allocation2 + $0x38] sm:$0xff] }
 0x69c   :  { %4695 = vmatpush3.bf16.msra.mxu0 %v4692_v38  ;;  %v4704_v34 = vpack.c.bf16 %v202_v33, %v201_v18  ;;  %v4809_v36 = vpack.i.bf16 %v202_v33, %v201_v18  ;;  %v204_v38 = vld [vmem:[#allocation2 + $0x58] sm:$0xff] }
 0x69d   :  { %4697 = vmatprep.subr.bf16.mxu0 %v4696_v47 }
 0x6a0   :  { %4699 = vmatpush3.bf16.msra.mxu0 %v4696_v47 }
 0x704   :  { %v1076_v40 = vpop.f32.mrb[4].mxu0 }
 0x705   :  { %v4421_v41 = vpop.f32.mrb[5].mxu0 }
 0x706   :  { %v205_v41 = vld [vmem:[#allocation2 + $0x68] sm:$0xff] }
 0x751   :  { %v1152_v42 = vpop.f32.mrb[16].mxu1 }
 0x752   :  { %1613 = vrot.lane.b32.xlu0 %v1152_v42, %s5009_s1  ;;  %v4426_v43 = vpop.f32.mrb[17].mxu1  ;;  %v206_v42 = vld [vmem:[#allocation2 + $0x78] sm:$0xff] }
 0x753   :  { %v4819_v43 = vpack.i.bf16 %v206_v42, %v205_v41 }
 0x759   :  { %v1304_v58 = vpop.f32.mrb[18].mxu1 }
 0x75a   :  { %v4436_v61 = vpop.f32.mrb[19].mxu1 }
 0x761   :  { %v1456_v48 = vpop.f32.mrb[20].mxu1 }
 0x762   :  { %1630 = vrot.lane.b32.xlu0 %v1456_v48, %s5009_s1  ;;  %v4446_v49 = vpop.f32.mrb[21].mxu1 }
 0x763   :  { %v4129_v49 = vld [vmem:[%s5700_s4 + $0x4] ss:$0 sm:$0xff] }
 0x765   :  { %v1608_v17 = vpop.f32.mrb[22].mxu1 }
 0x766   :  { %v1228_v23 = vpop.f32.mrb[6].mxu0  ;;  %v4456_v50 = vpop.f32.mrb[23].mxu1 }
 0x767   :  { %1617 = vrot.lane.b32.xlu1 %v1228_v23, %s4998_s29  ;;  %v4431_v51 = vpop.f32.mrb[7].mxu0  ;;  %v4130_v23 = vld [vmem:[%s5700_s4 + $0x5] ss:$0 sm:$0xff] }
 0x76a   :  { %v1380_v52 = vpop.f32.mrb[8].mxu0 }
 0x76b   :  { %1621 = vrot.lane.b32.xlu1 %v1304_v58, %s5010_s30  ;;  %v4441_v53 = vpop.f32.mrb[9].mxu0 }
 0x76e   :  { %v1532_v54 = vpop.f32.mrb[10].mxu0 }
 0x76f   :  { %1634 = vrot.lane.b32.xlu0 %v1532_v54, %s4998_s29  ;;  %v4451_v55 = vpop.f32.mrb[11].mxu0  ;;  %1638 = vrot.lane.b32.xlu1 %v1608_v17, %s5010_s30 }
 0x7c4   :  { %v1614_v60 = vpop.permute.xlu0 %1613 }
 0x7c5   :  { %v1624_v63 = vsel %vm309_vm4, %v1076_v40, %v1614_v60  ;;  %v4814_v40 = vpack.i.bf16 %v204_v38, %v203_v37  ;;  %v4134_v37 = vld [vmem:[%s5700_s4 + $0x7] ss:$0 sm:$0xff] }
 0x7d4   :  { %v1631_v0 = vpop.permute.xlu0 %1630 }
 0x7d5   :  { %v1641_v4 = vsel %vm309_vm4, %v1380_v52, %v1631_v0 }
 0x7d9   :  { %v1618_v62 = vpop.permute.xlu1 %1617 }
 0x7da   :  { %v1626_v1 = vsel %vm1625_vm5, %v1624_v63, %v1618_v62 }
 0x7dd   :  { %v1622_v2 = vpop.permute.xlu1 %1621 }
 0x7de   :  { %v1628_v3 = vsel %vm1627_vm6, %v1626_v1, %v1622_v2 }
 0x7df   :  { %4465 = vmatprep.mubr.msk.f32.mxu0 %vm143_vm2, %v1628_v3 }
 0x7e1   :  { %v1635_v5 = vpop.permute.xlu0 %1634  ;;  %v1639_v6 = vpop.permute.xlu1 %1638 }
 0x7e2   :  { %v1642_v29 = vsel %vm1625_vm5, %v1641_v4, %v1635_v5 }
 0x7e3   :  { %v1643_v7 = vsel %vm1627_vm6, %v1642_v29, %v1639_v6 }
 0x7e4   :  { %4466 = vmatmul.mubr.msk.f32.vlgmr.msra.gmra.mrb[12].mxu0 %vm143_vm2, %v1643_v7 }
 0x8b7   :  { %v4467_v8 = vpop.f32.mrb[12].mxu0 }
 0x8b8   :  { %v1743_v9 = vadd.f32 %v4467_v8, %v4126_v22  ;;  %v1737_v10 = vpop.f32.mrb[13].mxu0 }
 0x8b9   :  { %v1738_v11 = vadd.f32 %v4126_v22, %v1737_v10 }
 0x8ba   :  { %v1747_v13 = vadd.f32 %v1743_v9, %v5152_v14 }
 0x8bb   :  { %v1746_v15 = vadd.f32 %v1738_v11, %v5148_v12  ;;  %v199_v12 = vld [vmem:[#allocation2 + $0x8] sm:$0xff]  ;;  %v4131_v11 = vld [vmem:[%s5700_s4 + $0x6] ss:$0 sm:$0xff] }
 0x8bc   :  { %v1753_v16 = vsel %vm143_vm2, %v1747_v13, 0.0  ;;  %v4700_v32 = vpack.c.bf16 %v200_v31, %v199_v12  ;;  %v4804_v35 = vpack.i.bf16 %v200_v31, %v199_v12 }
 0x8bd   :  { %1754 = vadd.xlane.f32.xlu1 %v1753_v16  ;;  %v1750_v19 = vsel %vm143_vm2, %v1746_v15, 0.0 }
 0x8be   :  { %1751 = vadd.xlane.f32.xlu0 %v1750_v19  ;;  %4701 = vmatprep.subr.bf16.mxu1 %v4700_v32 }
 0x8bf   :  { %4703 = vmatpush3.bf16.msra.mxu1 %v4700_v32 }
 0x8c0   :  { %4705 = vmatprep.subr.bf16.mxu1 %v4704_v34 }
 0x8c3   :  { %4707 = vmatpush3.bf16.msra.mxu1 %v4704_v34 }
 0x8ce   :  { %4805 = vrot.lane.b32.xlu1 %v4804_v35, %s5007_s27 }
 0x8d2   :  { %4815 = vrot.lane.b32.xlu1 %v4814_v40, %s5007_s27 }
 0x8d6   :  { %4820 = vrot.lane.b32.xlu1 %v4819_v43, %s5007_s27 }
 0x94a   :  { %v1755_v20 = vpop.xlane.xlu1 %1754 }
 0x94b   :  { %v1757_v26 = vmul.f32 0.03125, %v1755_v20  ;;  %v1752_v27 = vpop.xlane.xlu0 %1751 }
 0x94c   :  { %v1756_v25 = vmul.f32 0.03125, %v1752_v27 }
 0x94d   :  { %v1759_v30 = vsub.f32 %v1747_v13, %v1757_v26 }
 0x94e   :  { %v1758_v56 = vsub.f32 %v1746_v15, %v1756_v25  ;;  %v4806_v60 = vpop.permute.xlu1 %4805 }
 0x94f   :  { %v1761_v28 = vmul.f32 %v1759_v30, %v1759_v30  ;;  %v4808_v62 = vunpack.i.h.bf16 %v4806_v60  ;;  %v4807_v63 = vunpack.i.l.bf16 %v4806_v60  ;;  %v5410_v60 = vld [vmem:[#allocation2 + $0xa0] sm:$0xff] }
 0x950   :  { %v1760_v57 = vmul.f32 %v1758_v56, %v1758_v56 }
 0x951   :  { %v1765_v14 = vsel %vm143_vm2, %v1761_v28, 0.0  ;;  %v4708_v0 = vpack.c.bf16 %v4808_v62, %v4807_v63  ;;  %v5412_v62 = vld [vmem:[#allocation2 + $0xb0] sm:$0xff] }
 0x952   :  { %v1762_v59 = vsel %vm143_vm2, %v1760_v57, 0.0  ;;  %v4816_v5 = vpop.permute.xlu1 %4815  ;;  %v4829_v63 = vpack.i.bf16 %v5412_v62, %v5410_v60 }
 0x953   :  { %1763 = vadd.xlane.f32.xlu0 %v1762_v59  ;;  %4709 = vmatprep.subr.bf16.mxu0 %v4708_v0  ;;  %v4818_v6 = vunpack.i.h.bf16 %v4816_v5  ;;  %v4817_v29 = vunpack.i.l.bf16 %v4816_v5 }
 0x954   :  { %4711 = vmatpush3.bf16.msra.mxu0 %v4708_v0  ;;  %v4728_v0 = vpack.c.bf16 %v5412_v62, %v5410_v60 }
 0x955   :  { %v4716_v7 = vpack.c.bf16 %v4818_v6, %v4817_v29 }
 0x956   :  { %v4821_v22 = vpop.permute.xlu1 %4820 }
 0x957   :  { %1766 = vadd.xlane.f32.xlu0 %v1765_v14  ;;  %v4823_v8 = vunpack.i.h.bf16 %v4821_v22  ;;  %v4822_v9 = vunpack.i.l.bf16 %v4821_v22 }
 0x959   :  { %v4720_v10 = vpack.c.bf16 %v4823_v8, %v4822_v9  ;;  %v4138_v8 = vld [vmem:[%s5700_s4 + $0x9] ss:$0 sm:$0xff] }
 0x96d   :  { %4810 = vrot.lane.b32.xlu0 %v4809_v36, %s5007_s27 }
 0x9e0   :  { %v1764_v44 = vpop.xlane.xlu0 %1763 }
 0x9e1   :  { %v1768_v45 = vmul.f32 0.03125, %v1764_v44 }
 0x9e3   :  { %v1770_v46 = vadd.f32 1e-12, %v1768_v45 }
 0x9e4   :  { %v1767_v47 = vpop.xlane.xlu0 %1766 }
 0x9e5   :  { %4890 = vrsqrt.f32 %v1770_v46  ;;  %v1769_v58 = vmul.f32 0.03125, %v1767_v47 }
 0x9e7   :  { %v1771_v61 = vadd.f32 1e-12, %v1769_v58 }
 0x9e8   :  { %v4811_v1 = vpop.permute.xlu0 %4810 }
 0x9e9   :  { %4892 = vrsqrt.f32 %v1771_v61  ;;  %v4813_v2 = vunpack.i.h.bf16 %v4811_v1  ;;  %v4812_v3 = vunpack.i.l.bf16 %v4811_v1 }
 0x9eb   :  { %v4712_v4 = vpack.c.bf16 %v4813_v2, %v4812_v3 }
 0x9ed   :  { %4713 = vmatprep.subr.bf16.mxu0 %v4712_v4 }
 0x9ee   :  { %4715 = vmatpush3.bf16.msra.mxu0 %v4712_v4 }
 0x9ef   :  { %v4891_v48 = vpop.eup %4890  ;;  %4717 = vmatprep.subr.bf16.mxu0 %v4716_v7 }
 0x9f0   :  { %v1774_v17 = vmul.f32 %v4891_v48, %v1758_v56 }
 0x9f2   :  { %v1780_v50 = vmul.f32 %v4129_v49, %v1774_v17  ;;  %4719 = vmatpush3.bf16.msra.mxu0 %v4716_v7  ;;  %v4137_v7 = vld [vmem:[%s5700_s4 + $0x8] ss:$0 sm:$0xff] }
 0x9f3   :  { %v4893_v51 = vpop.eup %4892  ;;  %4721 = vmatprep.subr.bf16.mxu0 %v4720_v10 }
 0x9f4   :  { %v1775_v52 = vmul.f32 %v4893_v51, %v1759_v30  ;;  %v5383_v53 = vadd.f32 %v4130_v23, %v1780_v50 }
 0x9f6   :  { %v1781_v54 = vmul.f32 %v4129_v49, %v1775_v52  ;;  %4476 = vmatprep.mubr.msk.f32.mxu1 %vm143_vm2, %v5383_v53  ;;  %4723 = vmatpush3.bf16.msra.mxu0 %v4720_v10 }
 0x9f7   :  { %4519 = vmatprep.subr.mxu0 %v5004_v21 }
 0x9f8   :  { %v1787_v55 = vadd.f32 %v4130_v23, %v1781_v54  ;;  %v5406_v54 = vld [vmem:[#allocation2 + $0x90] sm:$0xff] }
 0x9fa   :  { %4477 = vmatmul.mubr.msk.f32.vlgmr.msra.gmra.mrb[24].mxu1 %vm143_vm2, %v1787_v55 }
 0xacd   :  { %v4478_v13 = vpop.f32.mrb[24].mxu1 }
 0xace   :  { %v1871_v15 = vadd.f32 %v4478_v13, %v4131_v11  ;;  %v1865_v16 = vpop.f32.mrb[25].mxu1 }
 0xacf   :  { %v1866_v19 = vadd.f32 %v4131_v11, %v1865_v16 }
 0xad0   :  { %v1875_v20 = vmul.f32 %v1871_v15, %v1871_v15 }
 0xad1   :  { %v1874_v26 = vmul.f32 %v1866_v19, %v1866_v19 }
 0xad2   :  { %v1877_v27 = vmul.f32 %v1875_v20, %v1871_v15 }
 0xad3   :  { %v1876_v25 = vmul.f32 %v1874_v26, %v1866_v19 }
 0xad4   :  { %v1879_v30 = vmul.f32 0.044715, %v1877_v27 }
 0xad5   :  { %v1878_v56 = vmul.f32 0.044715, %v1876_v25 }
 0xad6   :  { %v1881_v57 = vadd.f32 %v1879_v30, %v1871_v15 }
 0xad7   :  { %v1880_v59 = vadd.f32 %v1878_v56, %v1866_v19 }
 0xad8   :  { %v1883_v28 = vmul.f32 0.7978846, %v1881_v57 }
 0xad9   :  { %v1882_v14 = vmul.f32 0.7978846, %v1880_v59 }
 0xada   :  { %4894 = vtanh.f32 %v1883_v28 }
 0xadb   :  { %4896 = vtanh.f32 %v1882_v14 }
 0xae4   :  { %v4895_v12 = vpop.eup %4894 }
 0xae5   :  { %v4897_v31 = vpop.eup %4896  ;;  %v1887_v32 = vadd.f32 1.0, %v4895_v12 }
 0xae6   :  { %v1886_v18 = vadd.f32 1.0, %v4897_v31 }
 0xae7   :  { %v1889_v33 = vmul.f32 0.5, %v1887_v32 }
 0xae8   :  { %v1888_v34 = vmul.f32 0.5, %v1886_v18 }
 0xae9   :  { %v1891_v36 = vmul.f32 %v1889_v33, %v1871_v15 }
 0xaea   :  { %v1890_v35 = vmul.f32 %v1888_v34, %v1866_v19  ;;  %v4139_v19 = vld [vmem:[%s5700_s4 + $0xa] ss:$0 sm:$0xff] }
 0xaec   :  { %4495 = vmatprep.mubr.msk.f32.mxu0 %vm1929_vm7, %v1890_v35 }
 0xaed   :  { %4496 = vmatmul.mubr.msk.f32.vlgmr.msra.gmra.mrb[14].mxu0 %vm1929_vm7, %v1891_v36 }
 0xaee   :  { %4521 = vmatprep.mubr.msk.f32.mxu0 %vm5006_vm3, %v5004_v21 }
 0xbc0   :  { %v4497_v38 = vpop.f32.mrb[14].mxu0 }
 0xbc1   :  { %v2008_v40 = vadd.f32 %v4497_v38, %v4134_v37  ;;  %v2002_v41 = vpop.f32.mrb[15].mxu0 }
 0xbc2   :  { %v2003_v42 = vadd.f32 %v4134_v37, %v2002_v41 }
 0xbc3   :  { %v2012_v43 = vadd.f32 %v2008_v40, %v1787_v55 }
 0xbc4   :  { %v2011_v44 = vadd.f32 %v2003_v42, %v5383_v53  ;;  %v5404_v53 = vld [vmem:[#allocation2 + $0x80] sm:$0xff] }
 0xbc5   :  { %v2018_v45 = vsel %vm143_vm2, %v2012_v43, 0.0  ;;  %v4724_v55 = vpack.c.bf16 %v5406_v54, %v5404_v53 }
 0xbc6   :  { %2019 = vadd.xlane.f32.xlu1 %v2018_v45  ;;  %v2015_v46 = vsel %vm143_vm2, %v2011_v44, 0.0 }
 0xbc7   :  { %2016 = vadd.xlane.f32.xlu0 %v2015_v46  ;;  %4725 = vmatprep.subr.bf16.mxu1 %v4724_v55 }
 0xbc8   :  { %4727 = vmatpush3.bf16.msra.mxu1 %v4724_v55 }
 0xbc9   :  { %4729 = vmatprep.subr.bf16.mxu1 %v4728_v0 }
 0xbcc   :  { %4731 = vmatpush3.bf16.msra.mxu1 %v4728_v0 }
 0xbcd   :  { %4509 = vmatprep.subr.mxu1 %v5004_v21 }
 0xc53   :  { %v2020_v47 = vpop.xlane.xlu1 %2019 }
 0xc54   :  { %v2022_v58 = vmul.f32 0.03125, %v2020_v47  ;;  %v2017_v61 = vpop.xlane.xlu0 %2016 }
 0xc55   :  { %v2021_v48 = vmul.f32 0.03125, %v2017_v61 }
 0xc56   :  { %v2024_v49 = vsub.f32 %v2012_v43, %v2022_v58 }
 0xc57   :  { %v2023_v17 = vsub.f32 %v2011_v44, %v2021_v48 }
 0xc58   :  { %v2026_v51 = vmul.f32 %v2024_v49, %v2024_v49 }
 0xc59   :  { %v2025_v23 = vmul.f32 %v2023_v17, %v2023_v17 }
 0xc5a   :  { %v2030_v52 = vsel %vm143_vm2, %v2026_v51, 0.0 }
 0xc5b   :  { %v2027_v50 = vsel %vm143_vm2, %v2025_v23, 0.0 }
 0xc5c   :  { %2028 = vadd.xlane.f32.xlu0 %v2027_v50 }
 0xc60   :  { %2031 = vadd.xlane.f32.xlu0 %v2030_v52 }
 0xce9   :  { %v2029_v1 = vpop.xlane.xlu0 %2028 }
 0xcea   :  { %v2033_v2 = vmul.f32 0.03125, %v2029_v1 }
 0xcec   :  { %v2035_v3 = vadd.f32 1e-12, %v2033_v2 }
 0xced   :  { %v2032_v4 = vpop.xlane.xlu0 %2031 }
 0xcee   :  { %4898 = vrsqrt.f32 %v2035_v3  ;;  %v2034_v5 = vmul.f32 0.03125, %v2032_v4 }
 0xcf0   :  { %v2036_v6 = vadd.f32 1e-12, %v2034_v5 }
 0xcf2   :  { %4900 = vrsqrt.f32 %v2036_v6 }
 0xcf8   :  { %v4899_v29 = vpop.eup %4898 }
 0xcf9   :  { %v2039_v22 = vmul.f32 %v4899_v29, %v2023_v17 }
 0xcfb   :  { %v2045_v9 = vmul.f32 %v4137_v7, %v2039_v22 }
 0xcfc   :  { %v4901_v10 = vpop.eup %4900 }
 0xcfd   :  { %v2040_v11 = vmul.f32 %v4901_v10, %v2024_v49  ;;  %v5425_v13 = vadd.f32 %v4138_v8, %v2045_v9 }
 0xcff   :  { %v2046_v15 = vmul.f32 %v4137_v7, %v2040_v11  ;;  %4506 = vmatprep.mubr.msk.f32.mxu1 %vm143_vm2, %v5425_v13 }
 0xd01   :  { %v5429_v16 = vadd.f32 %v4138_v8, %v2046_v15 }
 0xd03   :  { %4507 = vmatmul.mubr.msk.f32.vlgmr.msra.gmra.mrb[26].mxu1 %vm143_vm2, %v5429_v16 }
 0xd04   :  { %4511 = vmatprep.mubr.msk.f32.mxu1 %vm5006_vm3, %v5004_v21 }
 0xdd6   :  { %v4508_v20 = vpop.f32.mrb[26].mxu1 }
 0xdd7   :  { %v2143_v26 = vpop.f32.mrb[27].mxu1  ;;  %v5444_v25 = vadd.f32 %v4508_v20, %v4139_v19 }
 0xdd8   :  { %v5438_v27 = vadd.f32 %v4139_v19, %v2143_v26 }
 0xdda   :  { %2155 = vrot.lane.b32.xlu0 %v5438_v27, %s5001_s0  ;;  %2153 = vrot.lane.b32.xlu1 %v5438_v27, %s5002_s24 }
 0xdde   :  { %2162 = vrot.lane.b32.xlu0 %v5444_v25, %s5001_s0  ;;  %2157 = vrot.lane.b32.xlu1 %v5438_v27, %s5005_s26 }
 0xde2   :  { %2166 = vrot.lane.b32.xlu0 %v5438_v27, %s5003_s25  ;;  %2160 = vrot.lane.b32.xlu1 %v5444_v25, %s5002_s24 }
 0xde6   :  { %2164 = vrot.lane.b32.xlu1 %v5444_v25, %s5005_s26 }
 0xe4c   :  { %v5456_v30 = vpop.permute.xlu0 %2155  ;;  %v5458_v56 = vpop.permute.xlu1 %2153 }
 0xe4d   :  { %2318 = vrot.lane.b32.xlu0 %v5456_v30, %s5003_s25  ;;  %2242 = vrot.lane.b32.xlu1 %v5458_v56, %s5003_s25 }
 0xe50   :  { %v5464_v57 = vpop.permute.xlu0 %2162  ;;  %v5466_v59 = vpop.permute.xlu1 %2157 }
 0xe51   :  { %2470 = vrot.lane.b32.xlu0 %v5444_v25, %s5003_s25  ;;  %2394 = vrot.lane.b32.xlu1 %v5466_v59, %s5003_s25 }
 0xe54   :  { %v2167_v28 = vpop.permute.xlu0 %2166  ;;  %v5472_v14 = vpop.permute.xlu1 %2160 }
 0xe55   :  { %2622 = vrot.lane.b32.xlu0 %v5464_v57, %s5003_s25  ;;  %4510 = vmatpush3.xpose.msk.msra.mxu1 %vm309_vm4, %v2167_v28 }
 0xe56   :  { %2546 = vrot.lane.b32.xlu1 %v5472_v14, %s5003_s25  ;;  %4514 = vmatprep.subr.mxu1 %v5004_v21 }
 0xe58   :  { %4512 = vmatmul.mubr.msk.f32.vlgmr.msra.gmra.mrb[28].mxu1 %vm309_vm4, %v5438_v27  ;;  %v5482_v12 = vpop.permute.xlu1 %2164 }
 0xe59   :  { %4516 = vmatprep.mubr.msk.f32.mxu1 %vm5006_vm3, %v5004_v21 }
 0xe5a   :  { %2698 = vrot.lane.b32.xlu1 %v5482_v12, %s5003_s25 }
 0xebf   :  { %v2319_v31 = vpop.permute.xlu0 %2318  ;;  %v2243_v32 = vpop.permute.xlu1 %2242 }
 0xec0   :  { %4515 = vmatpush3.xpose.msk.msra.mxu1 %vm309_vm4, %v2243_v32  ;;  %4520 = vmatpush3.xpose.msk.msra.mxu0 %vm309_vm4, %v2319_v31 }
 0xec1   :  { %4529 = vmatprep.subr.mxu0 %v5004_v21  ;;  %4524 = vmatprep.subr.mxu1 %v5004_v21 }
 0xec3   :  { %4522 = vmatmul.mubr.msk.f32.vlgmr.msra.gmra.mrb[16].mxu0 %vm309_vm4, %v5456_v30  ;;  %v2471_v18 = vpop.permute.xlu0 %2470  ;;  %4517 = vmatmul.mubr.msk.f32.vlgmr.msra.gmra.mrb[30].mxu1 %vm309_vm4, %v5458_v56  ;;  %v2395_v33 = vpop.permute.xlu1 %2394 }
 0xec4   :  { %4525 = vmatpush3.xpose.msk.msra.mxu1 %vm309_vm4, %v2395_v33  ;;  %4530 = vmatpush3.xpose.msk.msra.mxu0 %vm309_vm4, %v2471_v18 }
 0xec5   :  { %4526 = vmatprep.mubr.msk.f32.mxu1 %vm5006_vm3, %v5004_v21  ;;  %4531 = vmatprep.mubr.msk.f32.mxu0 %vm5006_vm3, %v5004_v21 }
 0xec6   :  { %4539 = vmatprep.subr.mxu0 %v5004_v21  ;;  %4534 = vmatprep.subr.mxu1 %v5004_v21 }
 0xec7   :  { %4532 = vmatmul.mubr.msk.f32.vlgmr.msra.gmra.mrb[18].mxu0 %vm309_vm4, %v5444_v25  ;;  %v2623_v34 = vpop.permute.xlu0 %2622  ;;  %4527 = vmatmul.mubr.msk.f32.vlgmr.msra.gmra.mrb[32].mxu1 %vm309_vm4, %v5466_v59 }
 0xec8   :  { %v2547_v35 = vpop.permute.xlu1 %2546  ;;  %4540 = vmatpush3.xpose.msk.msra.mxu0 %vm309_vm4, %v2623_v34  ;;  %4536 = vmatprep.mubr.msk.f32.mxu1 %vm5006_vm3, %v5004_v21 }
 0xec9   :  { %4535 = vmatpush3.xpose.msk.msra.mxu1 %vm309_vm4, %v2547_v35  ;;  %4541 = vmatprep.mubr.msk.f32.mxu0 %vm5006_vm3, %v5004_v21 }
 0xeca   :  { %4544 = vmatprep.subr.mxu1 %v5004_v21  ;;  %4549 = vmatprep.subr.mxu0 %v5004_v21 }
 0xecb   :  { %4542 = vmatmul.mubr.msk.f32.vlgmr.msra.gmra.mrb[20].mxu0 %vm309_vm4, %v5464_v57 }
 0xecc   :  { %4537 = vmatmul.mubr.msk.f32.vlgmr.msra.gmra.mrb[34].mxu1 %vm309_vm4, %v5472_v14  ;;  %v2699_v36 = vpop.permute.xlu1 %2698  ;;  %4551 = vmatprep.mubr.msk.f32.mxu0 %vm5006_vm3, %v5004_v21 }
 0xecd   :  { %4545 = vmatpush3.xpose.msk.msra.mxu1 %vm309_vm4, %v2699_v36  ;;  %4546 = vmatprep.mubr.msk.f32.mxu1 %vm5006_vm3, %v5004_v21 }
 0xece   :  { %4554 = vmatprep.subr.mxu1 %v5004_v21 }
 0xed0   :  { %4547 = vmatmul.mubr.msk.f32.vlgmr.msra.gmra.mrb[36].mxu1 %vm309_vm4, %v5482_v12 }
 0xed1   :  { %4556 = vmatprep.mubr.msk.f32.mxu1 %vm5006_vm3, %v5004_v21 }
 0xf2b   :  { %v2238_v37 = vpop.f32.mrb[28].mxu1 }
 0xf2c   :  { %v2239_v38 = vadd.f32 %v2238_v37, %v5259_v39  ;;  %v4513_v40 = vpop.f32.mrb[29].mxu1 }
 0xf2e   :  { %v2774_v41 = vsel %vm309_vm4, %v2239_v38, -inf }
 0xf2f   :  { %2775 = vmax.xlane.f32.xlu0 %v2774_v41 }
 0xf96   :  { %v2314_v42 = vpop.f32.mrb[30].mxu1  ;;  %v2390_v43 = vpop.f32.mrb[16].mxu0 }
 0xf97   :  { %v2315_v44 = vadd.f32 %v2314_v42, %v5259_v39  ;;  %v2391_v45 = vadd.f32 %v2390_v43, %v5259_v39  ;;  %v4518_v46 = vpop.f32.mrb[31].mxu1  ;;  %v4523_v47 = vpop.f32.mrb[17].mxu0 }
 0xf99   :  { %v2780_v58 = vsel %vm309_vm4, %v2391_v45, -inf  ;;  %v2777_v61 = vsel %vm309_vm4, %v2315_v44, -inf }
 0xf9a   :  { %2781 = vmax.xlane.f32.xlu0 %v2780_v58  ;;  %v2542_v48 = vpop.f32.mrb[18].mxu0  ;;  %2778 = vmax.xlane.f32.xlu1 %v2777_v61  ;;  %v2466_v49 = vpop.f32.mrb[32].mxu1 }
 0xf9b   :  { %v2543_v17 = vadd.f32 %v2542_v48, %v5101_v24  ;;  %v2467_v23 = vadd.f32 %v2466_v49, %v5259_v39  ;;  %v4528_v50 = vpop.f32.mrb[33].mxu1  ;;  %v4533_v51 = vpop.f32.mrb[19].mxu0 }
 0xf9d   :  { %v2786_v52 = vsel %vm309_vm4, %v2543_v17, -inf  ;;  %v2783_v55 = vsel %vm309_vm4, %v2467_v23, -inf }
 0xf9e   :  { %v2694_v0 = vpop.f32.mrb[20].mxu0  ;;  %2787 = vmax.xlane.f32.xlu1 %v2786_v52  ;;  %2784 = vmax.xlane.f32.xlu0 %v2783_v55 }
 0xf9f   :  { %v2695_v1 = vadd.f32 %v2694_v0, %v5101_v24  ;;  %v2618_v2 = vpop.f32.mrb[34].mxu1  ;;  %v4543_v3 = vpop.f32.mrb[21].mxu0 }
 0xfa0   :  { %v2619_v4 = vadd.f32 %v2618_v2, %v5101_v24  ;;  %v4538_v5 = vpop.f32.mrb[35].mxu1 }
 0xfa1   :  { %v2792_v6 = vsel %vm309_vm4, %v2695_v1, -inf }
 0xfa2   :  { %2793 = vmax.xlane.f32.xlu1 %v2792_v6  ;;  %v2789_v39 = vsel %vm309_vm4, %v2619_v4, -inf }
 0xfa3   :  { %2790 = vmax.xlane.f32.xlu0 %v2789_v39  ;;  %v2770_v29 = vpop.f32.mrb[36].mxu1 }
 0xfa4   :  { %v2771_v7 = vadd.f32 %v2770_v29, %v5101_v24  ;;  %v4548_v22 = vpop.f32.mrb[37].mxu1 }
 0xfa6   :  { %v2795_v8 = vsel %vm309_vm4, %v2771_v7, -inf }
 0xfa7   :  { %2796 = vmax.xlane.f32.xlu0 %v2795_v8 }
 0xfb3   :  { %2862 = vrot.lane.b32.xlu1 %v5438_v27, %s5007_s27 }
 0xfb7   :  { %3014 = vrot.lane.b32.xlu1 %v5456_v30, %s5007_s27 }
 0xfbb   :  { %3090 = vrot.lane.b32.xlu1 %v5466_v59, %s5007_s27 }
 0xfbc   :  { %v2776_v24 = vpop.xlane.xlu0 %2775 }
 0xfbd   :  { %2938 = vrot.lane.b32.xlu0 %v5458_v56, %s5007_s27  ;;  %v2798_v9 = vsub.f32 %v2239_v38, %v2776_v24 }
 0xfbf   :  { %3242 = vrot.lane.b32.xlu1 %v5472_v14, %s5007_s27  ;;  %v2806_v10 = vmul.f32 1.442695, %v2798_v9  ;;  %v4824_v9 = vpack.i.bf16 %v5406_v54, %v5404_v53 }
 0xfc1   :  { %3166 = vrot.lane.b32.xlu0 %v5444_v25, %s5007_s27  ;;  %4902 = vpow2.f32 %v2806_v10 }
 0xfcb   :  { %v5558_v11 = vpop.eup %4902 }
 0xfcc   :  { %v2822_v15 = vsel %vm309_vm4, %v5558_v11, 0.0 }
 0xfe3   :  { %2823 = vadd.xlane.f32.xlu1 %v2822_v15 }
0x1027   :  { %v2782_v19 = vpop.xlane.xlu0 %2781  ;;  %v2779_v20 = vpop.xlane.xlu1 %2778 }
0x1028   :  { %v2800_v26 = vsub.f32 %v2391_v45, %v2782_v19  ;;  %v2799_v27 = vsub.f32 %v2315_v44, %v2779_v20 }
0x102a   :  { %v2810_v30 = vmul.f32 1.442695, %v2800_v26  ;;  %v2808_v56 = vmul.f32 1.442695, %v2799_v27 }
0x102b   :  { %v2785_v59 = vpop.xlane.xlu0 %2784  ;;  %v2788_v28 = vpop.xlane.xlu1 %2787 }
0x102c   :  { %4904 = vpow2.f32 %v2810_v30  ;;  %v2801_v25 = vsub.f32 %v2467_v23, %v2785_v59  ;;  %v2802_v14 = vsub.f32 %v2543_v17, %v2788_v28 }
0x102d   :  { %4906 = vpow2.f32 %v2808_v56 }
0x102e   :  { %v2812_v31 = vmul.f32 1.442695, %v2801_v25  ;;  %v2814_v32 = vmul.f32 1.442695, %v2802_v14 }
0x102f   :  { %v2794_v18 = vpop.xlane.xlu1 %2793 }
0x1030   :  { %4908 = vpow2.f32 %v2812_v31  ;;  %v2791_v33 = vpop.xlane.xlu0 %2790  ;;  %v2804_v34 = vsub.f32 %v2695_v1, %v2794_v18 }
0x1031   :  { %4910 = vpow2.f32 %v2814_v32  ;;  %v2803_v35 = vsub.f32 %v2619_v4, %v2791_v33 }
0x1032   :  { %v2818_v36 = vmul.f32 1.442695, %v2804_v34 }
0x1033   :  { %v2816_v37 = vmul.f32 1.442695, %v2803_v35  ;;  %v2863_v38 = vpop.permute.xlu1 %2862 }
0x1034   :  { %4912 = vpow2.f32 %v2818_v36  ;;  %v2797_v40 = vpop.xlane.xlu0 %2796  ;;  %4550 = vmatpush3.msra.mxu0 %v2863_v38 }
0x1035   :  { %4914 = vpow2.f32 %v2816_v37  ;;  %v2805_v41 = vsub.f32 %v2771_v7, %v2797_v40  ;;  %4559 = vmatprep.subr.mxu0 %v5004_v21 }
0x1036   :  { %v4905_v42 = vpop.eup %4904 }
0x1037   :  { %v4907_v43 = vpop.eup %4906  ;;  %v2820_v44 = vmul.f32 1.442695, %v2805_v41  ;;  %v2828_v45 = vsel %vm309_vm4, %v4905_v42, 0.0  ;;  %v3015_v0 = vpop.permute.xlu1 %3014 }
0x1038   :  { %v2939_v46 = vpop.permute.xlu0 %2938  ;;  %2829 = vadd.xlane.f32.xlu1 %v2828_v45  ;;  %v2825_v47 = vsel %vm309_vm4, %v4907_v43, 0.0 }
0x1039   :  { %4916 = vpow2.f32 %v2820_v44  ;;  %4555 = vmatpush3.msra.mxu1 %v2939_v46  ;;  %2826 = vadd.xlane.f32.xlu0 %v2825_v47 }
0x103a   :  { %v4909_v58 = vpop.eup %4908  ;;  %4564 = vmatprep.subr.mxu1 %v5004_v21 }
0x103b   :  { %v4911_v61 = vpop.eup %4910  ;;  %v2831_v48 = vsel %vm309_vm4, %v4909_v58, 0.0  ;;  %v3091_v1 = vpop.permute.xlu1 %3090 }
0x103c   :  { %v2834_v49 = vsel %vm309_vm4, %v4911_v61, 0.0  ;;  %v3167_v60 = vpop.permute.xlu0 %3166 }
0x103d   :  { %2832 = vadd.xlane.f32.xlu0 %v2831_v48  ;;  %2835 = vadd.xlane.f32.xlu1 %v2834_v49 }
0x103e   :  { %v5568_v17 = vpop.eup %4912 }
0x103f   :  { %v4915_v23 = vpop.eup %4914  ;;  %v2840_v50 = vsel %vm309_vm4, %v5568_v17, 0.0  ;;  %v3243_v2 = vpop.permute.xlu1 %3242 }
0x1040   :  { %v2837_v51 = vsel %vm309_vm4, %v4915_v23, 0.0 }
0x1041   :  { %2838 = vadd.xlane.f32.xlu0 %v2837_v51  ;;  %2841 = vadd.xlane.f32.xlu1 %v2840_v50 }
0x1043   :  { %v5573_v52 = vpop.eup %4916 }
0x1044   :  { %v2843_v55 = vsel %vm309_vm4, %v5573_v52, 0.0 }
0x1045   :  { %2844 = vadd.xlane.f32.xlu0 %v2843_v55 }
0x1052   :  { %3394 = vrot.lane.b32.xlu1 %v5482_v12, %s5007_s27 }
0x1056   :  { %4830 = vrot.lane.b32.xlu1 %v4829_v63, %s5008_s28 }
0x105b   :  { %3318 = vrot.lane.b32.xlu0 %v5464_v57, %s5007_s27 }
0x105f   :  { %4825 = vrot.lane.b32.xlu0 %v4824_v9, %s5008_s28 }
0x1070   :  { %v2824_v3 = vpop.xlane.xlu1 %2823 }
0x1071   :  { %4918 = vrcp.f32 %v2824_v3 }
0x107b   :  { %v4919_v4 = vpop.eup %4918 }
0x107c   :  { %v2854_v5 = vmul.f32 %v4919_v4, %v5558_v11 }
0x107e   :  { %4552 = vmatmul.mubr.msk.f32.vlgmr.msra.gmra.mrb[22].mxu0 %vm309_vm4, %v2854_v5 }
0x107f   :  { %4560 = vmatpush3.msra.mxu0 %v3015_v0  ;;  %4561 = vmatprep.mubr.msk.f32.mxu0 %vm5006_vm3, %v5004_v21 }
0x1080   :  { %4569 = vmatprep.subr.mxu0 %v5004_v21 }
0x10c5   :  { %v2830_v62 = vpop.xlane.xlu1 %2829 }
0x10c6   :  { %v2827_v63 = vpop.xlane.xlu0 %2826  ;;  %4920 = vrcp.f32 %v2830_v62 }
0x10c7   :  { %4922 = vrcp.f32 %v2827_v63 }
0x10ca   :  { %v2833_v57 = vpop.xlane.xlu0 %2832  ;;  %v2836_v12 = vpop.xlane.xlu1 %2835 }
0x10cb   :  { %4924 = vrcp.f32 %v2833_v57 }
0x10cc   :  { %4926 = vrcp.f32 %v2836_v12 }
0x10ce   :  { %v2839_v6 = vpop.xlane.xlu0 %2838  ;;  %v2842_v39 = vpop.xlane.xlu1 %2841 }
0x10cf   :  { %4928 = vrcp.f32 %v2839_v6 }
0x10d0   :  { %v4921_v29 = vpop.eup %4920  ;;  %4930 = vrcp.f32 %v2842_v39 }
0x10d1   :  { %v4923_v7 = vpop.eup %4922  ;;  %v2856_v22 = vmul.f32 %v4921_v29, %v4905_v42 }
0x10d2   :  { %v2855_v8 = vmul.f32 %v4923_v7, %v4907_v43  ;;  %v2845_v24 = vpop.xlane.xlu0 %2844  ;;  %v3395_v30 = vpop.permute.xlu1 %3394 }
0x10d3   :  { %4932 = vrcp.f32 %v2845_v24  ;;  %4562 = vmatmul.mubr.msk.f32.vlgmr.msra.gmra.mrb[24].mxu0 %vm309_vm4, %v2856_v22 }
0x10d4   :  { %4557 = vmatmul.mubr.msk.f32.vlgmr.msra.gmra.mrb[38].mxu1 %vm309_vm4, %v2855_v8  ;;  %4570 = vmatpush3.msra.mxu0 %v3167_v60  ;;  %v4166_v60 = vld [vmem:[%s5700_s4 + $0xb] ss:$0 sm:$0xff] }
0x10d5   :  { %v4925_v10 = vpop.eup %4924  ;;  %4565 = vmatpush3.msra.mxu1 %v3091_v1  ;;  %4566 = vmatprep.mubr.msk.f32.mxu1 %vm5006_vm3, %v5004_v21 }
0x10d6   :  { %v4927_v11 = vpop.eup %4926  ;;  %v2857_v15 = vmul.f32 %v4925_v10, %v4909_v58  ;;  %4571 = vmatprep.mubr.msk.f32.mxu0 %vm5006_vm3, %v5004_v21  ;;  %4574 = vmatprep.subr.mxu1 %v5004_v21  ;;  %v3319_v20 = vpop.permute.xlu0 %3318 }
0x10d7   :  { %v2858_v19 = vmul.f32 %v4927_v11, %v4911_v61  ;;  %4579 = vmatprep.subr.mxu0 %v5004_v21  ;;  %v4831_v28 = vpop.permute.xlu1 %4830 }
0x10d8   :  { %4567 = vmatmul.mubr.msk.f32.vlgmr.msra.gmra.mrb[40].mxu1 %vm309_vm4, %v2857_v15  ;;  %v4833_v25 = vunpack.i.h.bf16 %v4831_v28  ;;  %v4832_v14 = vunpack.i.l.bf16 %v4831_v28  ;;  %v2062_v28 = vld [vmem:[#allocation2 + $0xc8] sm:$0xff] }
0x10d9   :  { %v4929_v53 = vpop.eup %4928  ;;  %4572 = vmatmul.mubr.msk.f32.vlgmr.msra.gmra.mrb[26].mxu0 %vm309_vm4, %v2858_v19  ;;  %4575 = vmatpush3.msra.mxu1 %v3243_v2 }
0x10da   :  { %v4931_v54 = vpop.eup %4930  ;;  %v2859_v26 = vmul.f32 %v4929_v53, %v4915_v23  ;;  %4580 = vmatpush3.msra.mxu0 %v3319_v20  ;;  %4576 = vmatprep.mubr.msk.f32.mxu1 %vm5006_vm3, %v5004_v21  ;;  %v4826_v31 = vpop.permute.xlu0 %4825  ;;  %v4736_v34 = vpack.c.bf16 %v4833_v25, %v4832_v14  ;;  %v2059_v53 = vld [vmem:[#allocation2 + $0x98] sm:$0xff]  ;;  %v2064_v14 = vld [vmem:[#allocation2 + $0xe8] sm:$0xff] }
0x10db   :  { %v2860_v27 = vmul.f32 %v4931_v54, %v5568_v17  ;;  %4581 = vmatprep.mubr.msk.f32.mxu0 %vm5006_vm3, %v5004_v21  ;;  %4584 = vmatprep.subr.mxu1 %v5004_v21  ;;  %v4828_v32 = vunpack.i.h.bf16 %v4826_v31  ;;  %v4827_v18 = vunpack.i.l.bf16 %v4826_v31  ;;  %v2063_v25 = vld [vmem:[#allocation2 + $0xd8] sm:$0xff] }
0x10dc   :  { %4577 = vmatmul.mubr.msk.f32.vlgmr.msra.gmra.mrb[42].mxu1 %vm309_vm4, %v2859_v26  ;;  %v4844_v31 = vpack.i.bf16 %v2063_v25, %v2062_v28 }
0x10dd   :  { %v4933_v56 = vpop.eup %4932  ;;  %4582 = vmatmul.mubr.msk.f32.vlgmr.msra.gmra.mrb[28].mxu0 %vm309_vm4, %v2860_v27  ;;  %4585 = vmatpush3.msra.mxu1 %v3395_v30  ;;  %v4732_v33 = vpack.c.bf16 %v4828_v32, %v4827_v18  ;;  %v2060_v27 = vld [vmem:[#allocation2 + $0xa8] sm:$0xff]  ;;  %v2061_v30 = vld [vmem:[#allocation2 + $0xb8] sm:$0xff] }
0x10de   :  { %v2861_v59 = vmul.f32 %v4933_v56, %v5573_v52  ;;  %4586 = vmatprep.mubr.msk.f32.mxu1 %vm5006_vm3, %v5004_v21  ;;  %v4839_v56 = vpack.i.bf16 %v2061_v30, %v2060_v27  ;;  %v2065_v32 = vld [vmem:[#allocation2 + $0xf8] sm:$0xff] }
0x10df   :  { %4733 = vmatprep.subr.bf16.mxu0 %v4732_v33  ;;  %v4849_v18 = vpack.i.bf16 %v2065_v32, %v2064_v14 }
0x10e0   :  { %4587 = vmatmul.mubr.msk.f32.vlgmr.msra.gmra.mrb[44].mxu1 %vm309_vm4, %v2861_v59  ;;  %4735 = vmatpush3.bf16.msra.mxu0 %v4732_v33  ;;  %v4744_v59 = vpack.c.bf16 %v2061_v30, %v2060_v27 }
0x10e1   :  { %4737 = vmatprep.subr.bf16.mxu0 %v4736_v34 }
0x10e4   :  { %4739 = vmatpush3.bf16.msra.mxu0 %v4736_v34 }
0x1151   :  { %v2934_v35 = vpop.f32.mrb[22].mxu0 }
0x1152   :  { %v4553_v36 = vpop.f32.mrb[23].mxu0 }
0x11a6   :  { %v3086_v37 = vpop.f32.mrb[24].mxu0 }
0x11a7   :  { %v3010_v38 = vpop.f32.mrb[38].mxu1  ;;  %3475 = vrot.lane.b32.xlu1 %v3086_v37, %s4998_s29  ;;  %v4563_v40 = vpop.f32.mrb[25].mxu0 }
0x11a8   :  { %3471 = vrot.lane.b32.xlu0 %v3010_v38, %s5009_s1  ;;  %v4558_v41 = vpop.f32.mrb[39].mxu1 }
0x11a9   :  { %v4169_v41 = vld [vmem:[%s5700_s4 + $0xc] ss:$0 sm:$0xff] }
0x11ab   :  { %v3162_v42 = vpop.f32.mrb[40].mxu1 }
0x11ac   :  { %v3238_v43 = vpop.f32.mrb[26].mxu0  ;;  %v4568_v44 = vpop.f32.mrb[41].mxu1  ;;  %3479 = vrot.lane.b32.xlu1 %v3162_v42, %s5010_s30 }
0x11ad   :  { %v4573_v45 = vpop.f32.mrb[27].mxu0 }
0x11af   :  { %v3314_v46 = vpop.f32.mrb[42].mxu1 }
0x11b0   :  { %v3390_v47 = vpop.f32.mrb[28].mxu0  ;;  %3486 = vrot.lane.b32.xlu0 %v3314_v46, %s5009_s1  ;;  %v4578_v58 = vpop.f32.mrb[43].mxu1 }
0x11b1   :  { %v4583_v61 = vpop.f32.mrb[29].mxu0 }
0x11b3   :  { %v3466_v48 = vpop.f32.mrb[44].mxu1 }
0x11b4   :  { %3490 = vrot.lane.b32.xlu0 %v3390_v47, %s4998_s29  ;;  %3494 = vrot.lane.b32.xlu1 %v3466_v48, %s5010_s30  ;;  %v4588_v49 = vpop.f32.mrb[45].mxu1 }
0x1219   :  { %v3476_v17 = vpop.permute.xlu1 %3475 }
0x121a   :  { %v3472_v23 = vpop.permute.xlu0 %3471 }
0x121b   :  { %v3482_v50 = vsel %vm309_vm4, %v2934_v35, %v3472_v23 }
0x121c   :  { %v3483_v51 = vsel %vm1625_vm5, %v3482_v50, %v3476_v17 }
0x121e   :  { %v3480_v52 = vpop.permute.xlu1 %3479 }
0x121f   :  { %v3484_v55 = vsel %vm1627_vm6, %v3483_v51, %v3480_v52 }
0x1220   :  { %4597 = vmatprep.mubr.msk.f32.mxu0 %vm143_vm2, %v3484_v55 }
0x1222   :  { %v3487_v0 = vpop.permute.xlu0 %3486 }
0x1223   :  { %v3497_v1 = vsel %vm309_vm4, %v3238_v43, %v3487_v0  ;;  %v4170_v43 = vld [vmem:[%s5700_s4 + $0xd] ss:$0 sm:$0xff] }
0x1226   :  { %v3491_v2 = vpop.permute.xlu0 %3490  ;;  %v3495_v3 = vpop.permute.xlu1 %3494 }
0x1227   :  { %v3498_v4 = vsel %vm1625_vm5, %v3497_v1, %v3491_v2 }
0x1228   :  { %v3499_v5 = vsel %vm1627_vm6, %v3498_v4, %v3495_v3 }
0x1229   :  { %4598 = vmatmul.mubr.msk.f32.vlgmr.msra.gmra.mrb[30].mxu0 %vm143_vm2, %v3499_v5 }
0x12fc   :  { %v4599_v62 = vpop.f32.mrb[30].mxu0 }
0x12fd   :  { %v3599_v63 = vadd.f32 %v4599_v62, %v4166_v60  ;;  %v3593_v57 = vpop.f32.mrb[31].mxu0 }
0x12fe   :  { %v3594_v12 = vadd.f32 %v4166_v60, %v3593_v57 }
0x12ff   :  { %v3603_v6 = vadd.f32 %v3599_v63, %v5429_v16  ;;  %v4171_v63 = vld [vmem:[%s5700_s4 + $0xe] ss:$0 sm:$0xff] }
0x1300   :  { %v3602_v39 = vadd.f32 %v3594_v12, %v5425_v13  ;;  %v2058_v13 = vld [vmem:[#allocation2 + $0x88] sm:$0xff] }
0x1301   :  { %v3609_v29 = vsel %vm143_vm2, %v3603_v6, 0.0  ;;  %v4740_v54 = vpack.c.bf16 %v2059_v53, %v2058_v13  ;;  %v4834_v26 = vpack.i.bf16 %v2059_v53, %v2058_v13 }
0x1302   :  { %3610 = vadd.xlane.f32.xlu1 %v3609_v29  ;;  %v3606_v7 = vsel %vm143_vm2, %v3602_v39, 0.0 }
0x1303   :  { %3607 = vadd.xlane.f32.xlu0 %v3606_v7  ;;  %4741 = vmatprep.subr.bf16.mxu1 %v4740_v54 }
0x1304   :  { %4743 = vmatpush3.bf16.msra.mxu1 %v4740_v54 }
0x1305   :  { %4745 = vmatprep.subr.bf16.mxu1 %v4744_v59 }
0x1308   :  { %4747 = vmatpush3.bf16.msra.mxu1 %v4744_v59 }
0x1313   :  { %4835 = vrot.lane.b32.xlu1 %v4834_v26, %s5007_s27 }
0x1317   :  { %4845 = vrot.lane.b32.xlu1 %v4844_v31, %s5007_s27 }
0x131b   :  { %4850 = vrot.lane.b32.xlu1 %v4849_v18, %s5007_s27 }
0x138f   :  { %v3611_v22 = vpop.xlane.xlu1 %3610 }
0x1390   :  { %v3613_v8 = vmul.f32 0.03125, %v3611_v22  ;;  %v3608_v24 = vpop.xlane.xlu0 %3607 }
0x1391   :  { %v3612_v9 = vmul.f32 0.03125, %v3608_v24 }
0x1392   :  { %v3615_v10 = vsub.f32 %v3603_v6, %v3613_v8 }
0x1393   :  { %v3614_v11 = vsub.f32 %v3602_v39, %v3612_v9  ;;  %v4836_v48 = vpop.permute.xlu1 %4835 }
0x1394   :  { %v3617_v20 = vmul.f32 %v3615_v10, %v3615_v10  ;;  %v4838_v49 = vunpack.i.h.bf16 %v4836_v48  ;;  %v4837_v17 = vunpack.i.l.bf16 %v4836_v48  ;;  %v5011_v48 = vmov 0.0|0.0  }
0x1395   :  { %v3616_v15 = vmul.f32 %v3614_v11, %v3614_v11  ;;  %4764 = vmatprep.subr.bf16.mxu1 %v5011_v48 }
0x1396   :  { %v3621_v16 = vsel %vm143_vm2, %v3617_v20, 0.0  ;;  %v4748_v23 = vpack.c.bf16 %v4838_v49, %v4837_v17 }
0x1397   :  { %v3618_v19 = vsel %vm143_vm2, %v3616_v15, 0.0  ;;  %v4846_v0 = vpop.permute.xlu1 %4845 }
0x1398   :  { %3619 = vadd.xlane.f32.xlu0 %v3618_v19  ;;  %4749 = vmatprep.subr.bf16.mxu0 %v4748_v23  ;;  %v4848_v1 = vunpack.i.h.bf16 %v4846_v0  ;;  %v4847_v2 = vunpack.i.l.bf16 %v4846_v0 }
0x1399   :  { %4751 = vmatpush3.bf16.msra.mxu0 %v4748_v23 }
0x139a   :  { %v4756_v3 = vpack.c.bf16 %v4848_v1, %v4847_v2  ;;  %v4177_v1 = vld [vmem:[%s5700_s4 + $0x10] ss:$0 sm:$0xff] }
0x139b   :  { %v4851_v4 = vpop.permute.xlu1 %4850 }
0x139c   :  { %3622 = vadd.xlane.f32.xlu0 %v3621_v16  ;;  %v4853_v5 = vunpack.i.h.bf16 %v4851_v4  ;;  %v4852_v60 = vunpack.i.l.bf16 %v4851_v4 }
0x139e   :  { %v4760_v62 = vpack.c.bf16 %v4853_v5, %v4852_v60 }
0x13b2   :  { %4840 = vrot.lane.b32.xlu0 %v4839_v56, %s5007_s27  ;;  %v4174_v56 = vld [vmem:[%s5700_s4 + $0xf] ss:$0 sm:$0xff] }
0x1425   :  { %v3620_v33 = vpop.xlane.xlu0 %3619 }
0x1426   :  { %v3624_v34 = vmul.f32 0.03125, %v3620_v33 }
0x1428   :  { %v3626_v35 = vadd.f32 1e-12, %v3624_v34 }
0x1429   :  { %v3623_v36 = vpop.xlane.xlu0 %3622 }
0x142a   :  { %4934 = vrsqrt.f32 %v3626_v35  ;;  %v3625_v37 = vmul.f32 0.03125, %v3623_v36 }
0x142c   :  { %v3627_v38 = vadd.f32 1e-12, %v3625_v37 }
0x142d   :  { %v4841_v50 = vpop.permute.xlu0 %4840 }
0x142e   :  { %4936 = vrsqrt.f32 %v3627_v38  ;;  %v4843_v51 = vunpack.i.h.bf16 %v4841_v50  ;;  %v4842_v52 = vunpack.i.l.bf16 %v4841_v50 }
0x1430   :  { %v4752_v55 = vpack.c.bf16 %v4843_v51, %v4842_v52 }
0x1432   :  { %4753 = vmatprep.subr.bf16.mxu0 %v4752_v55 }
0x1433   :  { %4755 = vmatpush3.bf16.msra.mxu0 %v4752_v55 }
0x1434   :  { %v4935_v40 = vpop.eup %4934  ;;  %4757 = vmatprep.subr.bf16.mxu0 %v4756_v3 }
0x1435   :  { %v3630_v42 = vmul.f32 %v4935_v40, %v3614_v11 }
0x1437   :  { %v3636_v44 = vmul.f32 %v4169_v41, %v3630_v42  ;;  %4759 = vmatpush3.bf16.msra.mxu0 %v4756_v3  ;;  %v4178_v3 = vld [vmem:[%s5700_s4 + $0x11] ss:$0 sm:$0xff] }
0x1438   :  { %v4937_v45 = vpop.eup %4936  ;;  %4761 = vmatprep.subr.bf16.mxu0 %v4760_v62 }
0x1439   :  { %v3631_v46 = vmul.f32 %v4937_v45, %v3615_v10  ;;  %v5648_v47 = vadd.f32 %v4170_v43, %v3636_v44  ;;  %v3914_v45 = vld [vmem:[#allocation2 + $0x100] sm:$0xff] }
0x143b   :  { %v3637_v58 = vmul.f32 %v4169_v41, %v3631_v46  ;;  %4608 = vmatprep.mubr.msk.f32.mxu1 %vm143_vm2, %v5648_v47  ;;  %4763 = vmatpush3.bf16.msra.mxu0 %v4760_v62  ;;  %v3915_v46 = vld [vmem:[#allocation2 + $0x110] sm:$0xff] }
0x143d   :  { %v3643_v61 = vadd.f32 %v4170_v43, %v3637_v58  ;;  %v3916_v58 = vld [vmem:[#allocation2 + $0x120] sm:$0xff] }
0x143f   :  { %4609 = vmatmul.mubr.msk.f32.vlgmr.msra.gmra.mrb[46].mxu1 %vm143_vm2, %v3643_v61 }
0x1440   :  { %4638 = vmatprep.mubr.msk.f32.mxu1 %vm5006_vm3, %v5004_v21 }
0x1512   :  { %v4610_v57 = vpop.f32.mrb[46].mxu1 }
0x1513   :  { %v3727_v12 = vadd.f32 %v4610_v57, %v4171_v63  ;;  %v3721_v6 = vpop.f32.mrb[47].mxu1 }
0x1514   :  { %v3722_v39 = vadd.f32 %v4171_v63, %v3721_v6 }
0x1515   :  { %v3731_v29 = vmul.f32 %v3727_v12, %v3727_v12 }
0x1516   :  { %v3730_v7 = vmul.f32 %v3722_v39, %v3722_v39 }
0x1517   :  { %v3733_v22 = vmul.f32 %v3731_v29, %v3727_v12  ;;  %v3919_v29 = vld [vmem:[#allocation2 + $0x118] sm:$0xff] }
0x1518   :  { %v3732_v8 = vmul.f32 %v3730_v7, %v3722_v39  ;;  %v3920_v7 = vld [vmem:[#allocation2 + $0x128] sm:$0xff] }
0x1519   :  { %v3735_v24 = vmul.f32 0.044715, %v3733_v22 }
0x151a   :  { %v3734_v9 = vmul.f32 0.044715, %v3732_v8  ;;  %v3921_v8 = vld [vmem:[#allocation2 + $0x138] sm:$0xff] }
0x151b   :  { %v3737_v10 = vadd.f32 %v3735_v24, %v3727_v12  ;;  %v4774_v24 = vpack.c.bf16 %v3921_v8, %v3920_v7 }
0x151c   :  { %v3736_v11 = vadd.f32 %v3734_v9, %v3722_v39  ;;  %v4179_v9 = vld [vmem:[%s5700_s4 + $0x12] ss:$0 sm:$0xff] }
0x151d   :  { %v3739_v15 = vmul.f32 0.7978846, %v3737_v10 }
0x151e   :  { %v3738_v19 = vmul.f32 0.7978846, %v3736_v11 }
0x151f   :  { %4938 = vtanh.f32 %v3739_v15 }
0x1520   :  { %4940 = vtanh.f32 %v3738_v19 }
0x1529   :  { %v4939_v20 = vpop.eup %4938 }
0x152a   :  { %v4941_v16 = vpop.eup %4940  ;;  %v3743_v13 = vadd.f32 1.0, %v4939_v20 }
0x152b   :  { %v3742_v53 = vadd.f32 1.0, %v4941_v16 }
0x152c   :  { %v3745_v54 = vmul.f32 0.5, %v3743_v13 }
0x152d   :  { %v3744_v26 = vmul.f32 0.5, %v3742_v53 }
0x152e   :  { %v3747_v30 = vmul.f32 %v3745_v54, %v3727_v12 }
0x152f   :  { %v3746_v27 = vmul.f32 %v3744_v26, %v3722_v39  ;;  %v3918_v39 = vld [vmem:[#allocation2 + $0x108] sm:$0xff] }
0x1530   :  { %v4771_v22 = vpack.c.bf16 %v3919_v29, %v3918_v39 }
0x1531   :  { %4627 = vmatprep.mubr.msk.f32.mxu0 %vm1929_vm7, %v3746_v27 }
0x1532   :  { %4628 = vmatmul.mubr.msk.f32.vlgmr.msra.gmra.mrb[32].mxu0 %vm1929_vm7, %v3747_v30 }
0x1605   :  { %v4629_v59 = vpop.f32.mrb[32].mxu0 }
0x1606   :  { %v3863_v28 = vadd.f32 %v4629_v59, %v4174_v56  ;;  %v3857_v25 = vpop.f32.mrb[33].mxu0 }
0x1607   :  { %v3858_v14 = vadd.f32 %v4174_v56, %v3857_v25 }
0x1608   :  { %v3867_v31 = vadd.f32 %v3863_v28, %v3643_v61  ;;  %v3917_v61 = vld [vmem:[#allocation2 + $0x130] sm:$0xff] }
0x1609   :  { %v3866_v32 = vadd.f32 %v3858_v14, %v5648_v47  ;;  %v4765_v47 = vpack.c.bf16 %v3915_v46, %v3914_v45  ;;  %v4768_v49 = vpack.c.bf16 %v3917_v61, %v3916_v58 }
0x160a   :  { %v3873_v18 = vsel %vm143_vm2, %v3867_v31, 0.0 }
0x160b   :  { %3874 = vadd.xlane.f32.xlu0 %v3873_v18  ;;  %v3870_v33 = vsel %vm143_vm2, %v3866_v32, 0.0  ;;  %4766 = vmatpush3.bf16.msra.mxu1 %v4765_v47 }
0x160c   :  { %3871 = vadd.xlane.f32.xlu1 %v3870_v33  ;;  %4767 = vmatprep.subr.bf16.mxu1 %v5011_v48 }
0x160f   :  { %4769 = vmatpush3.bf16.msra.mxu1 %v4768_v49 }
0x1610   :  { %4770 = vmatprep.subr.bf16.mxu1 %v5011_v48 }
0x1698   :  { %v3875_v34 = vpop.xlane.xlu0 %3874 }
0x1699   :  { %v3877_v35 = vmul.f32 0.03125, %v3875_v34  ;;  %v3872_v36 = vpop.xlane.xlu1 %3871 }
0x169a   :  { %v3876_v37 = vmul.f32 0.03125, %v3872_v36 }
0x169b   :  { %v3879_v38 = vsub.f32 %v3867_v31, %v3877_v35 }
0x169c   :  { %v3878_v40 = vsub.f32 %v3866_v32, %v3876_v37 }
0x169d   :  { %v3881_v41 = vmul.f32 %v3879_v38, %v3879_v38 }
0x169e   :  { %v3880_v43 = vmul.f32 %v3878_v40, %v3878_v40 }
0x169f   :  { %v3885_v42 = vsel %vm143_vm2, %v3881_v41, 0.0 }
0x16a0   :  { %3886 = vadd.xlane.f32.xlu0 %v3885_v42  ;;  %v3882_v44 = vsel %vm143_vm2, %v3880_v43, 0.0 }
0x16a4   :  { %3883 = vadd.xlane.f32.xlu0 %v3882_v44 }
0x172d   :  { %v3887_v17 = vpop.xlane.xlu0 %3886 }
0x172e   :  { %v3889_v23 = vmul.f32 0.03125, %v3887_v17 }
0x1730   :  { %v3891_v50 = vadd.f32 1e-12, %v3889_v23 }
0x1731   :  { %v3884_v51 = vpop.xlane.xlu0 %3883 }
0x1732   :  { %4942 = vrsqrt.f32 %v3891_v50  ;;  %v3888_v52 = vmul.f32 0.03125, %v3884_v51 }
0x1734   :  { %v3890_v55 = vadd.f32 1e-12, %v3888_v52 }
0x1736   :  { %4944 = vrsqrt.f32 %v3890_v55 }
0x173c   :  { %v4943_v0 = vpop.eup %4942 }
0x173d   :  { %v3895_v2 = vmul.f32 %v4943_v0, %v3879_v38 }
0x173f   :  { %v3901_v4 = vmul.f32 %v4177_v1, %v3895_v2 }
0x1740   :  { %v4945_v5 = vpop.eup %4944 }
0x1741   :  { %v3894_v60 = vmul.f32 %v4945_v5, %v3878_v40  ;;  %v3907_v62 = vadd.f32 %v4178_v3, %v3901_v4 }
0x1743   :  { %v3900_v63 = vmul.f32 %v4177_v1, %v3894_v60  ;;  %v3909_v12 = vrot.slane %v3907_v62, 7 }
0x1745   :  { %v3906_v57 = vadd.f32 %v4178_v3, %v3900_v63 }
0x1747   :  { %v3912_v6 = vsel %vm3911_vm8, %v3906_v57, %v3909_v12 }
0x1748   :  { %4639 = vmatmul.mubr.msk.f32.vlgmr.msra.gmra.mrb[48].mxu1 %vm143_vm2, %v3912_v6 }
0x1749   :  { %4649 = vmatprep.mubr.msk.f32.mxu1 %vm5006_vm3, %v5004_v21  ;;  %4772 = vmatpush3.bf16.msra.mxu1 %v4771_v22  ;;  %v4181_v21 = vld [vmem:[%s5700_s4 + $0x13] ss:$0 sm:$0xff] }
0x174a   :  { %4773 = vmatprep.subr.bf16.mxu1 %v5011_v48 }
0x174d   :  { %4775 = vmatpush3.bf16.msra.mxu1 %v4774_v24 }
0x181b   :  { %v3996_v10 = vpop.f32.mrb[48].mxu1 }
0x181c   :  { %v3997_v11 = vadd.f32 %v4179_v9, %v3996_v10  ;;  %v4640_v15 = vpop.f32.mrb[49].mxu1 }
0x181e   :  { %4946 = vtanh.f32 %v3997_v11 }
0x1828   :  { %v4947_v19 = vpop.eup %4946 }
0x1829   :  { %4650 = vmatmul.mubr.msk.f32.vlgmr.msra.gmra.mrb[50].mxu1 %vm143_vm2, %v4947_v19 }
0x18fc   :  { %v4075_v20 = vpop.f32.mrb[50].mxu1 }
0x18fd   :  { %v4076_v16 = vadd.f32 %v4181_v21, %v4075_v20  ;;  %v4651_v13 = vpop.f32.mrb[51].mxu1 }
0x18ff   :  { %4079 = vst [vmem:[#allocation5] sm:$0x3] %v4076_v16 }
0x1900   :  { %4981 = shalt.err (!%p4978_p12)
}
0x1901   :  { %s4982_s15 = scalar_lea.hbm %s5701_s5, 32 }
0x1902   :  { %p4983_p13 = scmp.ne.s32.totalorder %s5701_s5, %s4982_s15  ;;  %p4986_p0 = scmp.lt.u32.totalorder %s4982_s15, %s5701_s5 }
0x1904   :  { %p4988_p1 = pnand %p4986_p0, %p4983_p13 }
0x1906   :  { %4991 = shalt.err (!%p4988_p1)
}
0x1907   :  { %4089 = dma.vmem_to_hbm [thread:$0]  %s4087_s12, 32, %s5701_s5, [#allocation4]  }
0x1908   :  { %4994 = dma.done.wait [#allocation4], 32  }
0x1909   :  { %4995 = vsyncadd [#allocation4], 4294967264 }
0x190a   :  { %4093 = vsyncpa [#allocation3], 1 }
0x190b   :  { %4094 = vsyncpa [#allocation4], 1 }

</bundles_post_ra>
